<compile_context>
chip_gen: v6e
topology: v6e:2x2x1
jax: 0.10.0
libtpu: 0.0.40
codegen_flags: <defaults>
</compile_context>

<pallas_src>
import math
import jax
import jax.numpy as jnp
import numpy as np
from jax.experimental import pallas as pl
from jax.experimental.pallas import tpu as pltpu

# -------------------- config (small, consistent with the module) --------------------
MODEL_DIM = 32
NUM_HEADS = 4
HEAD_DIM = max(MODEL_DIM // NUM_HEADS, 1)   # 8
FF_DIM = 64
BATCH = 2
TGT_SEQ = 8
SRC_SEQ = 8
LN_EPS = 1e-5
NEG_INF = -1e30


# -------------------- in-kernel helpers (traced, inlined) --------------------
def _layernorm(y, gamma, beta):
    mean = jnp.mean(y, axis=-1, keepdims=True)
    var = jnp.mean((y - mean) ** 2, axis=-1, keepdims=True)
    return (y - mean) * jax.lax.rsqrt(var + LN_EPS) * gamma + beta


def _attend(q, k, v, bias, wo, bo, scale):
    # q: (H, Sq, dk), k/v: (H, Sk, dk), bias: (Sq, Sk) additive, wo: (H, dk, D), bo: (1, D)
    logits = jnp.einsum("hqd,hkd->hqk", q, k,
                        preferred_element_type=jnp.float32) * scale + bias
    m = jnp.max(logits, axis=-1, keepdims=True)
    e = jnp.exp(logits - m)
    denom = jnp.sum(e, axis=-1, keepdims=True)
    p = e * pl.reciprocal(denom, approx=True)          # divide on the EUP slot
    ctx = jnp.einsum("hqk,hkd->hqd", p, v, preferred_element_type=jnp.float32)
    out = jnp.einsum("hqd,hde->hqe", ctx, wo, preferred_element_type=jnp.float32)
    return jnp.sum(out, axis=0) + bo                   # merge heads: (Sq, D)


# -------------------- fused decoder-layer kernel --------------------
def decoder_layer_kernel(
        tgt_ref, mem_ref, tgt_bias_ref, src_bias_ref,
        sa_wqkv_ref, sa_bqkv_ref, sa_wo_ref, sa_bo_ref, sa_g_ref, sa_b_ref,
        ca_wq_ref, ca_bq_ref, ca_wkv_ref, ca_bkv_ref, ca_wo_ref, ca_bo_ref,
        ca_g_ref, ca_b_ref,
        ff_w1_ref, ff_b1_ref, ff_w2_ref, ff_b2_ref, ff_g_ref, ff_b_ref,
        o_ref):
    # One batch element per grid step; all weights resident in VMEM.
    x = tgt_ref[0]                 # (Sq, D)
    mem = mem_ref[0]               # (Sk, D)
    tgt_bias = tgt_bias_ref[0]     # (Sq, Sq) additive
    src_bias = src_bias_ref[0]     # (Sq, Sk) additive

    H = ca_wq_ref.shape[0]
    dk = ca_wq_ref.shape[2]
    scale = 1.0 / math.sqrt(dk)
    Sq, D = x.shape
    Sk = mem.shape[0]

    # ---- self-attention + residual + LayerNorm (dropout = identity) ----
    x_rep = jnp.broadcast_to(x, (3 * H, Sq, D))
    proj = jnp.einsum("hsd,hde->hse", x_rep, sa_wqkv_ref[...],
                      preferred_element_type=jnp.float32) + sa_bqkv_ref[...]
    q, k, v = proj[:H], proj[H:2 * H], proj[2 * H:]          # leading-dim splits
    attn = _attend(q, k, v, tgt_bias, sa_wo_ref[...], sa_bo_ref[...], scale)
    x = _layernorm(x + attn, sa_g_ref[...], sa_b_ref[...])

    # ---- cross-attention + residual + LayerNorm ----
    xq_rep = jnp.broadcast_to(x, (H, Sq, D))
    q = jnp.einsum("hsd,hde->hse", xq_rep, ca_wq_ref[...],
                   preferred_element_type=jnp.float32) + ca_bq_ref[...]
    mem_rep = jnp.broadcast_to(mem, (2 * H, Sk, D))
    kvp = jnp.einsum("hsd,hde->hse", mem_rep, ca_wkv_ref[...],
                     preferred_element_type=jnp.float32) + ca_bkv_ref[...]
    k, v = kvp[:H], kvp[H:]
    attn = _attend(q, k, v, src_bias, ca_wo_ref[...], ca_bo_ref[...], scale)
    x = _layernorm(x + attn, ca_g_ref[...], ca_b_ref[...])

    # ---- feed-forward + residual + LayerNorm ----
    h = jnp.dot(x, ff_w1_ref[...], preferred_element_type=jnp.float32) + ff_b1_ref[...]
    h = jnp.maximum(h, 0.0)
    out = jnp.dot(h, ff_w2_ref[...], preferred_element_type=jnp.float32) + ff_b2_ref[...]
    o_ref[0] = _layernorm(x + out, ff_g_ref[...], ff_b_ref[...])


# -------------------- wrappers --------------------
def _rep_spec(shape):
    """Full-array block, identical across all grid steps (stays VMEM-resident)."""
    nd = len(shape)
    return pl.BlockSpec(shape, lambda b, _nd=nd: (0,) * _nd)


def _pack_attn_params(p, cross):
    """Pack per-head PyTorch-style weights into stacked, loop-free layouts."""
    H, D, dk = p["wq"].shape
    wo_h = p["wo"].reshape(H, dk, D)   # (H*dk, D) -> (H, dk, D), head-major rows
    if cross:
        return dict(wq=p["wq"], bq=p["bq"],
                    wkv=jnp.concatenate([p["wk"], p["wv"]], axis=0),   # (2H, D, dk)
                    bkv=jnp.concatenate([p["bk"], p["bv"]], axis=0),   # (2H, 1, dk)
                    wo=wo_h, bo=p["bo"], gamma=p["gamma"], beta=p["beta"])
    return dict(wqkv=jnp.concatenate([p["wq"], p["wk"], p["wv"]], axis=0),  # (3H, D, dk)
                bqkv=jnp.concatenate([p["bq"], p["bk"], p["bv"]], axis=0),  # (3H, 1, dk)
                wo=wo_h, bo=p["bo"], gamma=p["gamma"], beta=p["beta"])


def transformer_decoder_layer(target, memory, src_mask, tgt_mask, params):
    B, Sq, D = target.shape
    Sk = memory.shape[1]

    sa = _pack_attn_params(params["self_attn"], cross=False)
    ca = _pack_attn_params(params["cross_attn"], cross=True)
    ff = params["ff"]

    # masked_fill(mask == 0, -inf)  ->  additive bias with large finite negative
    tgt_bias = jnp.where(tgt_mask == 0, NEG_INF, 0.0).astype(jnp.float32)
    src_bias = jnp.where(src_mask == 0, NEG_INF, 0.0).astype(jnp.float32)

    operands = [
        target, memory, tgt_bias, src_bias,
        sa["wqkv"], sa["bqkv"], sa["wo"], sa["bo"], sa["gamma"], sa["beta"],
        ca["wq"], ca["bq"], ca["wkv"], ca["bkv"], ca["wo"], ca["bo"],
        ca["gamma"], ca["beta"],
        ff["w1"], ff["b1"], ff["w2"], ff["b2"], ff["gamma"], ff["beta"],
    ]

    in_specs = [
        pl.BlockSpec((1, Sq, D), lambda b: (b, 0, 0)),
        pl.BlockSpec((1, Sk, D), lambda b: (b, 0, 0)),
        pl.BlockSpec((1, Sq, Sq), lambda b: (b, 0, 0)),
        pl.BlockSpec((1, Sq, Sk), lambda b: (b, 0, 0)),
    ] + [_rep_spec(op.shape) for op in operands[4:]]

    return pl.pallas_call(
        decoder_layer_kernel,
        out_shape=jax.ShapeDtypeStruct((B, Sq, D), jnp.float32),
        grid=(B,),
        in_specs=in_specs,
        out_specs=pl.BlockSpec((1, Sq, D), lambda b: (b, 0, 0)),
        compiler_params=pltpu.CompilerParams(dimension_semantics=("parallel",)),
    )(*operands)


# -------------------- parameter init (deterministic, synthetic) --------------------
def init_mha_params(key, model_dim, num_heads, head_dim):
    ks = jax.random.split(key, 8)
    s = 0.1
    return {
        "wq": s * jax.random.normal(ks[0], (num_heads, model_dim, head_dim), jnp.float32),
        "bq": s * jax.random.normal(ks[1], (num_heads, 1, head_dim), jnp.float32),
        "wk": s * jax.random.normal(ks[2], (num_heads, model_dim, head_dim), jnp.float32),
        "bk": s * jax.random.normal(ks[3], (num_heads, 1, head_dim), jnp.float32),
        "wv": s * jax.random.normal(ks[4], (num_heads, model_dim, head_dim), jnp.float32),
        "bv": s * jax.random.normal(ks[5], (num_heads, 1, head_dim), jnp.float32),
        "wo": s * jax.random.normal(ks[6], (num_heads * head_dim, model_dim), jnp.float32),
        "bo": s * jax.random.normal(ks[7], (1, model_dim), jnp.float32),
        "gamma": jnp.ones((1, model_dim), jnp.float32),
        "beta": jnp.zeros((1, model_dim), jnp.float32),
    }


def init_ff_params(key, model_dim, ff_dim):
    ks = jax.random.split(key, 4)
    s = 0.1
    return {
        "w1": s * jax.random.normal(ks[0], (model_dim, ff_dim), jnp.float32),
        "b1": s * jax.random.normal(ks[1], (1, ff_dim), jnp.float32),
        "w2": s * jax.random.normal(ks[2], (ff_dim, model_dim), jnp.float32),
        "b2": s * jax.random.normal(ks[3], (1, model_dim), jnp.float32),
        "gamma": jnp.ones((1, model_dim), jnp.float32),
        "beta": jnp.zeros((1, model_dim), jnp.float32),
    }


# -------------------- pure-JAX reference (for verification) --------------------
def ref_mha_block(x, kv, mask, p):
    outs = []
    for h in range(p["wq"].shape[0]):
        q = x @ p["wq"][h] + p["bq"][h, 0]
        k = kv @ p["wk"][h] + p["bk"][h, 0]
        v = kv @ p["wv"][h] + p["bv"][h, 0]
        logits = (q @ jnp.swapaxes(k, -1, -2)) / math.sqrt(q.shape[-1])
        logits = jnp.where(mask == 0.0, -jnp.inf, logits)
        attn = jax.nn.softmax(logits, axis=-1)
        outs.append(attn @ v)
    out = jnp.concatenate(outs, -1) @ p["wo"] + p["bo"][0]
    y = x + out
    mean = y.mean(-1, keepdims=True)
    var = ((y - mean) ** 2).mean(-1, keepdims=True)
    return (y - mean) / jnp.sqrt(var + LN_EPS) * p["gamma"][0] + p["beta"][0]


def ref_ff_block(x, p):
    h = jnp.maximum(x @ p["w1"] + p["b1"][0], 0.0)
    y = x + (h @ p["w2"] + p["b2"][0])
    mean = y.mean(-1, keepdims=True)
    var = ((y - mean) ** 2).mean(-1, keepdims=True)
    return (y - mean) / jnp.sqrt(var + LN_EPS) * p["gamma"][0] + p["beta"][0]


def ref_decoder_layer(target, memory, src_mask, tgt_mask, params):
    t = ref_mha_block(target, target, tgt_mask, params["self_attn"])
    t = ref_mha_block(t, memory, src_mask, params["cross_attn"])
    return ref_ff_block(t, params["ff"])


# -------------------- main --------------------
if __name__ == "__main__":
    key = jax.random.PRNGKey(0)
    k_t, k_m, k_sa, k_ca, k_ff = jax.random.split(key, 5)

    target = jax.random.normal(k_t, (BATCH, TGT_SEQ, MODEL_DIM), jnp.float32)
    memory = jax.random.normal(k_m, (BATCH, SRC_SEQ, MODEL_DIM), jnp.float32)

    # causal mask for self-attention, all-ones mask for cross-attention (0 => masked)
    tgt_mask = jnp.tril(jnp.ones((TGT_SEQ, TGT_SEQ), jnp.float32))
    tgt_mask = jnp.broadcast_to(tgt_mask, (BATCH, TGT_SEQ, TGT_SEQ))
    src_mask = jnp.ones((BATCH, TGT_SEQ, SRC_SEQ), jnp.float32)

    params = {
        "self_attn": init_mha_params(k_sa, MODEL_DIM, NUM_HEADS, HEAD_DIM),
        "cross_attn": init_mha_params(k_ca, MODEL_DIM, NUM_HEADS, HEAD_DIM),
        "ff": init_ff_params(k_ff, MODEL_DIM, FF_DIM),
    }

    out = transformer_decoder_layer(target, memory, src_mask, tgt_mask, params)
    out = jax.block_until_ready(out)

    ref = ref_decoder_layer(target, memory, src_mask, tgt_mask, params)
    # Tolerance allows for the EUP approximate-reciprocal softmax divide.
    np.testing.assert_allclose(np.asarray(out), np.asarray(ref), rtol=5e-3, atol=5e-3)

    print("KERNEL_OK")
</pallas_src>

<mosaic_0001>
module attributes {stable_mosaic.version = 11 : i64} {
  func.func @decoder_layer_kernel(%arg0: i32, %arg1: memref<1x8x32xf32, #tpu.memory_space<vmem>>, %arg2: memref<1x8x32xf32, #tpu.memory_space<vmem>>, %arg3: memref<1x8x8xf32, #tpu.memory_space<vmem>>, %arg4: memref<1x8x8xf32, #tpu.memory_space<vmem>>, %arg5: memref<12x32x8xf32, #tpu.memory_space<vmem>>, %arg6: memref<12x1x8xf32, #tpu.memory_space<vmem>>, %arg7: memref<4x8x32xf32, #tpu.memory_space<vmem>>, %arg8: memref<1x32xf32, #tpu.memory_space<vmem>>, %arg9: memref<1x32xf32, #tpu.memory_space<vmem>>, %arg10: memref<1x32xf32, #tpu.memory_space<vmem>>, %arg11: memref<4x32x8xf32, #tpu.memory_space<vmem>>, %arg12: memref<4x1x8xf32, #tpu.memory_space<vmem>>, %arg13: memref<8x32x8xf32, #tpu.memory_space<vmem>>, %arg14: memref<8x1x8xf32, #tpu.memory_space<vmem>>, %arg15: memref<4x8x32xf32, #tpu.memory_space<vmem>>, %arg16: memref<1x32xf32, #tpu.memory_space<vmem>>, %arg17: memref<1x32xf32, #tpu.memory_space<vmem>>, %arg18: memref<1x32xf32, #tpu.memory_space<vmem>>, %arg19: memref<32x64xf32, #tpu.memory_space<vmem>>, %arg20: memref<1x64xf32, #tpu.memory_space<vmem>>, %arg21: memref<64x32xf32, #tpu.memory_space<vmem>>, %arg22: memref<1x32xf32, #tpu.memory_space<vmem>>, %arg23: memref<1x32xf32, #tpu.memory_space<vmem>>, %arg24: memref<1x32xf32, #tpu.memory_space<vmem>>, %arg25: memref<1x8x32xf32, #tpu.memory_space<vmem>>) attributes {dimension_semantics = [#tpu.dimension_semantics<parallel>], iteration_bounds = array<i64: 2>, scalar_prefetch = 0 : i64, scratch_operands = 0 : i64, tpu.core_type = #tpu.core_type<tc>, window_params = [{transform_indices = @transform_0, window_bounds = array<i64: 1, 8, 32>}, {transform_indices = @transform_1, window_bounds = array<i64: 1, 8, 32>}, {transform_indices = @transform_2, window_bounds = array<i64: 1, 8, 8>}, {transform_indices = @transform_3, window_bounds = array<i64: 1, 8, 8>}, {pipeline_mode = #tpu.pipeline_mode<synchronous>, transform_indices = @transform_4, window_bounds = array<i64: 12, 32, 8>}, {pipeline_mode = #tpu.pipeline_mode<synchronous>, transform_indices = @transform_5, window_bounds = array<i64: 12, 1, 8>}, {pipeline_mode = #tpu.pipeline_mode<synchronous>, transform_indices = @transform_6, window_bounds = array<i64: 4, 8, 32>}, {pipeline_mode = #tpu.pipeline_mode<synchronous>, transform_indices = @transform_7, window_bounds = array<i64: 1, 32>}, {pipeline_mode = #tpu.pipeline_mode<synchronous>, transform_indices = @transform_8, window_bounds = array<i64: 1, 32>}, {pipeline_mode = #tpu.pipeline_mode<synchronous>, transform_indices = @transform_9, window_bounds = array<i64: 1, 32>}, {pipeline_mode = #tpu.pipeline_mode<synchronous>, transform_indices = @transform_10, window_bounds = array<i64: 4, 32, 8>}, {pipeline_mode = #tpu.pipeline_mode<synchronous>, transform_indices = @transform_11, window_bounds = array<i64: 4, 1, 8>}, {pipeline_mode = #tpu.pipeline_mode<synchronous>, transform_indices = @transform_12, window_bounds = array<i64: 8, 32, 8>}, {pipeline_mode = #tpu.pipeline_mode<synchronous>, transform_indices = @transform_13, window_bounds = array<i64: 8, 1, 8>}, {pipeline_mode = #tpu.pipeline_mode<synchronous>, transform_indices = @transform_14, window_bounds = array<i64: 4, 8, 32>}, {pipeline_mode = #tpu.pipeline_mode<synchronous>, transform_indices = @transform_15, window_bounds = array<i64: 1, 32>}, {pipeline_mode = #tpu.pipeline_mode<synchronous>, transform_indices = @transform_16, window_bounds = array<i64: 1, 32>}, {pipeline_mode = #tpu.pipeline_mode<synchronous>, transform_indices = @transform_17, window_bounds = array<i64: 1, 32>}, {pipeline_mode = #tpu.pipeline_mode<synchronous>, transform_indices = @transform_18, window_bounds = array<i64: 32, 64>}, {pipeline_mode = #tpu.pipeline_mode<synchronous>, transform_indices = @transform_19, window_bounds = array<i64: 1, 64>}, {pipeline_mode = #tpu.pipeline_mode<synchronous>, transform_indices = @transform_20, window_bounds = array<i64: 64, 32>}, {pipeline_mode = #tpu.pipeline_mode<synchronous>, transform_indices = @transform_21, window_bounds = array<i64: 1, 32>}, {pipeline_mode = #tpu.pipeline_mode<synchronous>, transform_indices = @transform_22, window_bounds = array<i64: 1, 32>}, {pipeline_mode = #tpu.pipeline_mode<synchronous>, transform_indices = @transform_23, window_bounds = array<i64: 1, 32>}, {transform_indices = @transform_24, window_bounds = array<i64: 1, 8, 32>}]} {
    %c0 = arith.constant 0 : index
    %c0_0 = arith.constant 0 : index
    %c0_1 = arith.constant 0 : index
    %0 = vector.load %arg1[%c0, %c0_0, %c0_1] : memref<1x8x32xf32, #tpu.memory_space<vmem>>, vector<1x8x32xf32>
    %1 = vector.shape_cast %0 : vector<1x8x32xf32> to vector<8x32xf32>
    %c0_2 = arith.constant 0 : index
    %c0_3 = arith.constant 0 : index
    %c0_4 = arith.constant 0 : index
    %2 = vector.load %arg2[%c0_2, %c0_3, %c0_4] : memref<1x8x32xf32, #tpu.memory_space<vmem>>, vector<1x8x32xf32>
    %3 = vector.shape_cast %2 : vector<1x8x32xf32> to vector<8x32xf32>
    %c0_5 = arith.constant 0 : index
    %c0_6 = arith.constant 0 : index
    %c0_7 = arith.constant 0 : index
    %4 = vector.load %arg3[%c0_5, %c0_6, %c0_7] : memref<1x8x8xf32, #tpu.memory_space<vmem>>, vector<1x8x8xf32>
    %5 = vector.shape_cast %4 : vector<1x8x8xf32> to vector<8x8xf32>
    %c0_8 = arith.constant 0 : index
    %c0_9 = arith.constant 0 : index
    %c0_10 = arith.constant 0 : index
    %6 = vector.load %arg4[%c0_8, %c0_9, %c0_10] : memref<1x8x8xf32, #tpu.memory_space<vmem>>, vector<1x8x8xf32>
    %7 = vector.shape_cast %6 : vector<1x8x8xf32> to vector<8x8xf32>
    %8 = vector.shape_cast %1 : vector<8x32xf32> to vector<1x8x32xf32>
    %9 = vector.broadcast %8 : vector<1x8x32xf32> to vector<12x8x32xf32>
    %c0_11 = arith.constant 0 : index
    %c0_12 = arith.constant 0 : index
    %c0_13 = arith.constant 0 : index
    %10 = vector.load %arg5[%c0_11, %c0_12, %c0_13] : memref<12x32x8xf32, #tpu.memory_space<vmem>>, vector<12x32x8xf32>
    "tpu.trace_start"() <{level = 10 : i32, message = "hsd,hde->hse"}> : () -> ()
    %cst = arith.constant dense<0.000000e+00> : vector<12x8x8xf32>
    %11 = tpu.matmul %9, %10, %cst {dimension_numbers = #tpu.dot_dimension_numbers<[2], [1], [1], [2], [0, 0, 0, 1, 1, 2], [0], [0]>} : vector<12x8x32xf32>, vector<12x32x8xf32>, vector<12x8x8xf32> -> vector<12x8x8xf32>
    "tpu.trace_stop"() : () -> ()
    %c0_14 = arith.constant 0 : index
    %c0_15 = arith.constant 0 : index
    %c0_16 = arith.constant 0 : index
    %12 = vector.load %arg6[%c0_14, %c0_15, %c0_16] : memref<12x1x8xf32, #tpu.memory_space<vmem>>, vector<12x1x8xf32>
    %13 = vector.broadcast %12 : vector<12x1x8xf32> to vector<12x8x8xf32>
    %14 = arith.addf %11, %13 : vector<12x8x8xf32>
    %15 = vector.extract_strided_slice %14 {offsets = [0, 0, 0], sizes = [4, 8, 8], strides = [1, 1, 1]} : vector<12x8x8xf32> to vector<4x8x8xf32>
    %16 = vector.extract_strided_slice %14 {offsets = [4, 0, 0], sizes = [4, 8, 8], strides = [1, 1, 1]} : vector<12x8x8xf32> to vector<4x8x8xf32>
    %17 = vector.extract_strided_slice %14 {offsets = [8, 0, 0], sizes = [4, 8, 8], strides = [1, 1, 1]} : vector<12x8x8xf32> to vector<4x8x8xf32>
    %c0_17 = arith.constant 0 : index
    %c0_18 = arith.constant 0 : index
    %c0_19 = arith.constant 0 : index
    %18 = vector.load %arg7[%c0_17, %c0_18, %c0_19] : memref<4x8x32xf32, #tpu.memory_space<vmem>>, vector<4x8x32xf32>
    %c0_20 = arith.constant 0 : index
    %c0_21 = arith.constant 0 : index
    %19 = vector.load %arg8[%c0_20, %c0_21] : memref<1x32xf32, #tpu.memory_space<vmem>>, vector<1x32xf32>
    "tpu.trace_start"() <{level = 10 : i32, message = "hqd,hkd->hqk"}> : () -> ()
    %cst_22 = arith.constant dense<0.000000e+00> : vector<4x8x8xf32>
    %20 = tpu.matmul %15, %16, %cst_22 {dimension_numbers = #tpu.dot_dimension_numbers<[2], [2], [1], [1], [0, 0, 0, 1, 1, 1], [0], [0]>} : vector<4x8x8xf32>, vector<4x8x8xf32>, vector<4x8x8xf32> -> vector<4x8x8xf32>
    "tpu.trace_stop"() : () -> ()
    %cst_23 = arith.constant 0.353553385 : f32
    %21 = vector.broadcast %cst_23 : f32 to vector<4x8x8xf32>
    %22 = arith.mulf %20, %21 : vector<4x8x8xf32>
    %23 = vector.shape_cast %5 : vector<8x8xf32> to vector<1x8x8xf32>
    %24 = vector.broadcast %23 : vector<1x8x8xf32> to vector<4x8x8xf32>
    %25 = arith.addf %22, %24 : vector<4x8x8xf32>
    %cst_24 = arith.constant dense<0xFF800000> : vector<4x8xf32>
    %26 = vector.multi_reduction <maximumf>, %25, %cst_24 [2] : vector<4x8x8xf32> to vector<4x8xf32>
    %27 = vector.shape_cast %26 : vector<4x8xf32> to vector<4x8x1xf32>
    %28 = vector.broadcast %27 : vector<4x8x1xf32> to vector<4x8x8xf32>
    %29 = arith.subf %25, %28 : vector<4x8x8xf32>
    %30 = math.exp %29 : vector<4x8x8xf32>
    %cst_25 = arith.constant dense<0.000000e+00> : vector<4x8xf32>
    %31 = vector.multi_reduction <add>, %30, %cst_25 [2] : vector<4x8x8xf32> to vector<4x8xf32>
    %32 = vector.shape_cast %31 : vector<4x8xf32> to vector<4x8x1xf32>
    %33 = tpu.reciprocal %32 {approx = true} : vector<4x8x1xf32> -> vector<4x8x1xf32>
    %34 = vector.broadcast %33 : vector<4x8x1xf32> to vector<4x8x8xf32>
    %35 = arith.mulf %30, %34 : vector<4x8x8xf32>
    "tpu.trace_start"() <{level = 10 : i32, message = "hqk,hkd->hqd"}> : () -> ()
    %cst_26 = arith.constant dense<0.000000e+00> : vector<4x8x8xf32>
    %36 = tpu.matmul %35, %17, %cst_26 {dimension_numbers = #tpu.dot_dimension_numbers<[2], [1], [1], [2], [0, 0, 0, 1, 1, 2], [0], [0]>} : vector<4x8x8xf32>, vector<4x8x8xf32>, vector<4x8x8xf32> -> vector<4x8x8xf32>
    "tpu.trace_stop"() : () -> ()
    "tpu.trace_start"() <{level = 10 : i32, message = "hqd,hde->hqe"}> : () -> ()
    %cst_27 = arith.constant dense<0.000000e+00> : vector<4x8x32xf32>
    %37 = tpu.matmul %36, %18, %cst_27 {dimension_numbers = #tpu.dot_dimension_numbers<[2], [1], [1], [2], [0, 0, 0, 1, 1, 2], [0], [0]>} : vector<4x8x8xf32>, vector<4x8x32xf32>, vector<4x8x32xf32> -> vector<4x8x32xf32>
    "tpu.trace_stop"() : () -> ()
    %cst_28 = arith.constant dense<0.000000e+00> : vector<8x32xf32>
    %38 = vector.multi_reduction <add>, %37, %cst_28 [0] : vector<4x8x32xf32> to vector<8x32xf32>
    %39 = vector.broadcast %19 : vector<1x32xf32> to vector<8x32xf32>
    %40 = arith.addf %38, %39 : vector<8x32xf32>
    %41 = arith.addf %1, %40 : vector<8x32xf32>
    %c0_29 = arith.constant 0 : index
    %c0_30 = arith.constant 0 : index
    %42 = vector.load %arg9[%c0_29, %c0_30] : memref<1x32xf32, #tpu.memory_space<vmem>>, vector<1x32xf32>
    %c0_31 = arith.constant 0 : index
    %c0_32 = arith.constant 0 : index
    %43 = vector.load %arg10[%c0_31, %c0_32] : memref<1x32xf32, #tpu.memory_space<vmem>>, vector<1x32xf32>
    %cst_33 = arith.constant dense<0.000000e+00> : vector<8xf32>
    %44 = vector.multi_reduction <add>, %41, %cst_33 [1] : vector<8x32xf32> to vector<8xf32>
    %45 = vector.shape_cast %44 : vector<8xf32> to vector<8x1xf32>
    %cst_34 = arith.constant 3.200000e+01 : f32
    %46 = vector.broadcast %cst_34 : f32 to vector<8x1xf32>
    %47 = arith.divf %45, %46 : vector<8x1xf32>
    %48 = vector.broadcast %47 : vector<8x1xf32> to vector<8x32xf32>
    %49 = arith.subf %41, %48 : vector<8x32xf32>
    %50 = arith.mulf %49, %49 : vector<8x32xf32>
    %cst_35 = arith.constant dense<0.000000e+00> : vector<8xf32>
    %51 = vector.multi_reduction <add>, %50, %cst_35 [1] : vector<8x32xf32> to vector<8xf32>
    %52 = vector.shape_cast %51 : vector<8xf32> to vector<8x1xf32>
    %cst_36 = arith.constant 3.200000e+01 : f32
    %53 = vector.broadcast %cst_36 : f32 to vector<8x1xf32>
    %54 = arith.divf %52, %53 : vector<8x1xf32>
    %55 = vector.broadcast %47 : vector<8x1xf32> to vector<8x32xf32>
    %56 = arith.subf %41, %55 : vector<8x32xf32>
    %cst_37 = arith.constant 9.99999974E-6 : f32
    %57 = vector.broadcast %cst_37 : f32 to vector<8x1xf32>
    %58 = arith.addf %54, %57 : vector<8x1xf32>
    %59 = math.rsqrt %58 : vector<8x1xf32>
    %60 = vector.broadcast %59 : vector<8x1xf32> to vector<8x32xf32>
    %61 = arith.mulf %56, %60 : vector<8x32xf32>
    %62 = vector.broadcast %42 : vector<1x32xf32> to vector<8x32xf32>
    %63 = arith.mulf %61, %62 : vector<8x32xf32>
    %64 = vector.broadcast %43 : vector<1x32xf32> to vector<8x32xf32>
    %65 = arith.addf %63, %64 : vector<8x32xf32>
    %66 = vector.shape_cast %65 : vector<8x32xf32> to vector<1x8x32xf32>
    %67 = vector.broadcast %66 : vector<1x8x32xf32> to vector<4x8x32xf32>
    %c0_38 = arith.constant 0 : index
    %c0_39 = arith.constant 0 : index
    %c0_40 = arith.constant 0 : index
    %68 = vector.load %arg11[%c0_38, %c0_39, %c0_40] : memref<4x32x8xf32, #tpu.memory_space<vmem>>, vector<4x32x8xf32>
    "tpu.trace_start"() <{level = 10 : i32, message = "hsd,hde->hse"}> : () -> ()
    %cst_41 = arith.constant dense<0.000000e+00> : vector<4x8x8xf32>
    %69 = tpu.matmul %67, %68, %cst_41 {dimension_numbers = #tpu.dot_dimension_numbers<[2], [1], [1], [2], [0, 0, 0, 1, 1, 2], [0], [0]>} : vector<4x8x32xf32>, vector<4x32x8xf32>, vector<4x8x8xf32> -> vector<4x8x8xf32>
    "tpu.trace_stop"() : () -> ()
    %c0_42 = arith.constant 0 : index
    %c0_43 = arith.constant 0 : index
    %c0_44 = arith.constant 0 : index
    %70 = vector.load %arg12[%c0_42, %c0_43, %c0_44] : memref<4x1x8xf32, #tpu.memory_space<vmem>>, vector<4x1x8xf32>
    %71 = vector.broadcast %70 : vector<4x1x8xf32> to vector<4x8x8xf32>
    %72 = arith.addf %69, %71 : vector<4x8x8xf32>
    %73 = vector.shape_cast %3 : vector<8x32xf32> to vector<1x8x32xf32>
    %74 = vector.broadcast %73 : vector<1x8x32xf32> to vector<8x8x32xf32>
    %c0_45 = arith.constant 0 : index
    %c0_46 = arith.constant 0 : index
    %c0_47 = arith.constant 0 : index
    %75 = vector.load %arg13[%c0_45, %c0_46, %c0_47] : memref<8x32x8xf32, #tpu.memory_space<vmem>>, vector<8x32x8xf32>
    "tpu.trace_start"() <{level = 10 : i32, message = "hsd,hde->hse"}> : () -> ()
    %cst_48 = arith.constant dense<0.000000e+00> : vector<8x8x8xf32>
    %76 = tpu.matmul %74, %75, %cst_48 {dimension_numbers = #tpu.dot_dimension_numbers<[2], [1], [1], [2], [0, 0, 0, 1, 1, 2], [0], [0]>} : vector<8x8x32xf32>, vector<8x32x8xf32>, vector<8x8x8xf32> -> vector<8x8x8xf32>
    "tpu.trace_stop"() : () -> ()
    %c0_49 = arith.constant 0 : index
    %c0_50 = arith.constant 0 : index
    %c0_51 = arith.constant 0 : index
    %77 = vector.load %arg14[%c0_49, %c0_50, %c0_51] : memref<8x1x8xf32, #tpu.memory_space<vmem>>, vector<8x1x8xf32>
    %78 = vector.broadcast %77 : vector<8x1x8xf32> to vector<8x8x8xf32>
    %79 = arith.addf %76, %78 : vector<8x8x8xf32>
    %80 = vector.extract_strided_slice %79 {offsets = [0, 0, 0], sizes = [4, 8, 8], strides = [1, 1, 1]} : vector<8x8x8xf32> to vector<4x8x8xf32>
    %81 = vector.extract_strided_slice %79 {offsets = [4, 0, 0], sizes = [4, 8, 8], strides = [1, 1, 1]} : vector<8x8x8xf32> to vector<4x8x8xf32>
    %c0_52 = arith.constant 0 : index
    %c0_53 = arith.constant 0 : index
    %c0_54 = arith.constant 0 : index
    %82 = vector.load %arg15[%c0_52, %c0_53, %c0_54] : memref<4x8x32xf32, #tpu.memory_space<vmem>>, vector<4x8x32xf32>
    %c0_55 = arith.constant 0 : index
    %c0_56 = arith.constant 0 : index
    %83 = vector.load %arg16[%c0_55, %c0_56] : memref<1x32xf32, #tpu.memory_space<vmem>>, vector<1x32xf32>
    "tpu.trace_start"() <{level = 10 : i32, message = "hqd,hkd->hqk"}> : () -> ()
    %cst_57 = arith.constant dense<0.000000e+00> : vector<4x8x8xf32>
    %84 = tpu.matmul %72, %80, %cst_57 {dimension_numbers = #tpu.dot_dimension_numbers<[2], [2], [1], [1], [0, 0, 0, 1, 1, 1], [0], [0]>} : vector<4x8x8xf32>, vector<4x8x8xf32>, vector<4x8x8xf32> -> vector<4x8x8xf32>
    "tpu.trace_stop"() : () -> ()
    %cst_58 = arith.constant 0.353553385 : f32
    %85 = vector.broadcast %cst_58 : f32 to vector<4x8x8xf32>
    %86 = arith.mulf %84, %85 : vector<4x8x8xf32>
    %87 = vector.shape_cast %7 : vector<8x8xf32> to vector<1x8x8xf32>
    %88 = vector.broadcast %87 : vector<1x8x8xf32> to vector<4x8x8xf32>
    %89 = arith.addf %86, %88 : vector<4x8x8xf32>
    %cst_59 = arith.constant dense<0xFF800000> : vector<4x8xf32>
    %90 = vector.multi_reduction <maximumf>, %89, %cst_59 [2] : vector<4x8x8xf32> to vector<4x8xf32>
    %91 = vector.shape_cast %90 : vector<4x8xf32> to vector<4x8x1xf32>
    %92 = vector.broadcast %91 : vector<4x8x1xf32> to vector<4x8x8xf32>
    %93 = arith.subf %89, %92 : vector<4x8x8xf32>
    %94 = math.exp %93 : vector<4x8x8xf32>
    %cst_60 = arith.constant dense<0.000000e+00> : vector<4x8xf32>
    %95 = vector.multi_reduction <add>, %94, %cst_60 [2] : vector<4x8x8xf32> to vector<4x8xf32>
    %96 = vector.shape_cast %95 : vector<4x8xf32> to vector<4x8x1xf32>
    %97 = tpu.reciprocal %96 {approx = true} : vector<4x8x1xf32> -> vector<4x8x1xf32>
    %98 = vector.broadcast %97 : vector<4x8x1xf32> to vector<4x8x8xf32>
    %99 = arith.mulf %94, %98 : vector<4x8x8xf32>
    "tpu.trace_start"() <{level = 10 : i32, message = "hqk,hkd->hqd"}> : () -> ()
    %cst_61 = arith.constant dense<0.000000e+00> : vector<4x8x8xf32>
    %100 = tpu.matmul %99, %81, %cst_61 {dimension_numbers = #tpu.dot_dimension_numbers<[2], [1], [1], [2], [0, 0, 0, 1, 1, 2], [0], [0]>} : vector<4x8x8xf32>, vector<4x8x8xf32>, vector<4x8x8xf32> -> vector<4x8x8xf32>
    "tpu.trace_stop"() : () -> ()
    "tpu.trace_start"() <{level = 10 : i32, message = "hqd,hde->hqe"}> : () -> ()
    %cst_62 = arith.constant dense<0.000000e+00> : vector<4x8x32xf32>
    %101 = tpu.matmul %100, %82, %cst_62 {dimension_numbers = #tpu.dot_dimension_numbers<[2], [1], [1], [2], [0, 0, 0, 1, 1, 2], [0], [0]>} : vector<4x8x8xf32>, vector<4x8x32xf32>, vector<4x8x32xf32> -> vector<4x8x32xf32>
    "tpu.trace_stop"() : () -> ()
    %cst_63 = arith.constant dense<0.000000e+00> : vector<8x32xf32>
    %102 = vector.multi_reduction <add>, %101, %cst_63 [0] : vector<4x8x32xf32> to vector<8x32xf32>
    %103 = vector.broadcast %83 : vector<1x32xf32> to vector<8x32xf32>
    %104 = arith.addf %102, %103 : vector<8x32xf32>
    %105 = arith.addf %65, %104 : vector<8x32xf32>
    %c0_64 = arith.constant 0 : index
    %c0_65 = arith.constant 0 : index
    %106 = vector.load %arg17[%c0_64, %c0_65] : memref<1x32xf32, #tpu.memory_space<vmem>>, vector<1x32xf32>
    %c0_66 = arith.constant 0 : index
    %c0_67 = arith.constant 0 : index
    %107 = vector.load %arg18[%c0_66, %c0_67] : memref<1x32xf32, #tpu.memory_space<vmem>>, vector<1x32xf32>
    %cst_68 = arith.constant dense<0.000000e+00> : vector<8xf32>
    %108 = vector.multi_reduction <add>, %105, %cst_68 [1] : vector<8x32xf32> to vector<8xf32>
    %109 = vector.shape_cast %108 : vector<8xf32> to vector<8x1xf32>
    %cst_69 = arith.constant 3.200000e+01 : f32
    %110 = vector.broadcast %cst_69 : f32 to vector<8x1xf32>
    %111 = arith.divf %109, %110 : vector<8x1xf32>
    %112 = vector.broadcast %111 : vector<8x1xf32> to vector<8x32xf32>
    %113 = arith.subf %105, %112 : vector<8x32xf32>
    %114 = arith.mulf %113, %113 : vector<8x32xf32>
    %cst_70 = arith.constant dense<0.000000e+00> : vector<8xf32>
    %115 = vector.multi_reduction <add>, %114, %cst_70 [1] : vector<8x32xf32> to vector<8xf32>
    %116 = vector.shape_cast %115 : vector<8xf32> to vector<8x1xf32>
    %cst_71 = arith.constant 3.200000e+01 : f32
    %117 = vector.broadcast %cst_71 : f32 to vector<8x1xf32>
    %118 = arith.divf %116, %117 : vector<8x1xf32>
    %119 = vector.broadcast %111 : vector<8x1xf32> to vector<8x32xf32>
    %120 = arith.subf %105, %119 : vector<8x32xf32>
    %cst_72 = arith.constant 9.99999974E-6 : f32
    %121 = vector.broadcast %cst_72 : f32 to vector<8x1xf32>
    %122 = arith.addf %118, %121 : vector<8x1xf32>
    %123 = math.rsqrt %122 : vector<8x1xf32>
    %124 = vector.broadcast %123 : vector<8x1xf32> to vector<8x32xf32>
    %125 = arith.mulf %120, %124 : vector<8x32xf32>
    %126 = vector.broadcast %106 : vector<1x32xf32> to vector<8x32xf32>
    %127 = arith.mulf %125, %126 : vector<8x32xf32>
    %128 = vector.broadcast %107 : vector<1x32xf32> to vector<8x32xf32>
    %129 = arith.addf %127, %128 : vector<8x32xf32>
    %c0_73 = arith.constant 0 : index
    %c0_74 = arith.constant 0 : index
    %130 = vector.load %arg19[%c0_73, %c0_74] : memref<32x64xf32, #tpu.memory_space<vmem>>, vector<32x64xf32>
    %cst_75 = arith.constant dense<0.000000e+00> : vector<8x64xf32>
    %131 = tpu.matmul %129, %130, %cst_75 {dimension_numbers = #tpu.dot_dimension_numbers<[1], [0], [0], [1], [0, 0, 1, 1], [], []>} : vector<8x32xf32>, vector<32x64xf32>, vector<8x64xf32> -> vector<8x64xf32>
    %c0_76 = arith.constant 0 : index
    %c0_77 = arith.constant 0 : index
    %132 = vector.load %arg20[%c0_76, %c0_77] : memref<1x64xf32, #tpu.memory_space<vmem>>, vector<1x64xf32>
    %133 = vector.broadcast %132 : vector<1x64xf32> to vector<8x64xf32>
    %134 = arith.addf %131, %133 : vector<8x64xf32>
    %cst_78 = arith.constant 0.000000e+00 : f32
    %135 = vector.broadcast %cst_78 : f32 to vector<8x64xf32>
    %136 = arith.maximumf %134, %135 : vector<8x64xf32>
    %c0_79 = arith.constant 0 : index
    %c0_80 = arith.constant 0 : index
    %137 = vector.load %arg21[%c0_79, %c0_80] : memref<64x32xf32, #tpu.memory_space<vmem>>, vector<64x32xf32>
    %cst_81 = arith.constant dense<0.000000e+00> : vector<8x32xf32>
    %138 = tpu.matmul %136, %137, %cst_81 {dimension_numbers = #tpu.dot_dimension_numbers<[1], [0], [0], [1], [0, 0, 1, 1], [], []>} : vector<8x64xf32>, vector<64x32xf32>, vector<8x32xf32> -> vector<8x32xf32>
    %c0_82 = arith.constant 0 : index
    %c0_83 = arith.constant 0 : index
    %139 = vector.load %arg22[%c0_82, %c0_83] : memref<1x32xf32, #tpu.memory_space<vmem>>, vector<1x32xf32>
    %140 = vector.broadcast %139 : vector<1x32xf32> to vector<8x32xf32>
    %141 = arith.addf %138, %140 : vector<8x32xf32>
    %142 = arith.addf %129, %141 : vector<8x32xf32>
    %c0_84 = arith.constant 0 : index
    %c0_85 = arith.constant 0 : index
    %143 = vector.load %arg23[%c0_84, %c0_85] : memref<1x32xf32, #tpu.memory_space<vmem>>, vector<1x32xf32>
    %c0_86 = arith.constant 0 : index
    %c0_87 = arith.constant 0 : index
    %144 = vector.load %arg24[%c0_86, %c0_87] : memref<1x32xf32, #tpu.memory_space<vmem>>, vector<1x32xf32>
    %cst_88 = arith.constant dense<0.000000e+00> : vector<8xf32>
    %145 = vector.multi_reduction <add>, %142, %cst_88 [1] : vector<8x32xf32> to vector<8xf32>
    %146 = vector.shape_cast %145 : vector<8xf32> to vector<8x1xf32>
    %cst_89 = arith.constant 3.200000e+01 : f32
    %147 = vector.broadcast %cst_89 : f32 to vector<8x1xf32>
    %148 = arith.divf %146, %147 : vector<8x1xf32>
    %149 = vector.broadcast %148 : vector<8x1xf32> to vector<8x32xf32>
    %150 = arith.subf %142, %149 : vector<8x32xf32>
    %151 = arith.mulf %150, %150 : vector<8x32xf32>
    %cst_90 = arith.constant dense<0.000000e+00> : vector<8xf32>
    %152 = vector.multi_reduction <add>, %151, %cst_90 [1] : vector<8x32xf32> to vector<8xf32>
    %153 = vector.shape_cast %152 : vector<8xf32> to vector<8x1xf32>
    %cst_91 = arith.constant 3.200000e+01 : f32
    %154 = vector.broadcast %cst_91 : f32 to vector<8x1xf32>
    %155 = arith.divf %153, %154 : vector<8x1xf32>
    %156 = vector.broadcast %148 : vector<8x1xf32> to vector<8x32xf32>
    %157 = arith.subf %142, %156 : vector<8x32xf32>
    %cst_92 = arith.constant 9.99999974E-6 : f32
    %158 = vector.broadcast %cst_92 : f32 to vector<8x1xf32>
    %159 = arith.addf %155, %158 : vector<8x1xf32>
    %160 = math.rsqrt %159 : vector<8x1xf32>
    %161 = vector.broadcast %160 : vector<8x1xf32> to vector<8x32xf32>
    %162 = arith.mulf %157, %161 : vector<8x32xf32>
    %163 = vector.broadcast %143 : vector<1x32xf32> to vector<8x32xf32>
    %164 = arith.mulf %162, %163 : vector<8x32xf32>
    %165 = vector.broadcast %144 : vector<1x32xf32> to vector<8x32xf32>
    %166 = arith.addf %164, %165 : vector<8x32xf32>
    %c0_93 = arith.constant 0 : index
    %c0_94 = arith.constant 0 : index
    %c0_95 = arith.constant 0 : index
    %167 = vector.load %arg25[%c0_93, %c0_94, %c0_95] : memref<1x8x32xf32, #tpu.memory_space<vmem>>, vector<1x8x32xf32>
    %168 = vector.shape_cast %167 : vector<1x8x32xf32> to vector<8x32xf32>
    %169 = vector.shape_cast %166 : vector<8x32xf32> to vector<1x8x32xf32>
    tpu.vector_store %arg25[%c0_93, %c0_94, %c0_95], %169 {strides = array<i32>} : memref<1x8x32xf32, #tpu.memory_space<vmem>>, vector<1x8x32xf32>,
    return
  }
  func.func @transform_0(%arg0: i32) -> (i32, i32, i32) {
    %c0_i32 = arith.constant 0 : i32
    %c0_i32_0 = arith.constant 0 : i32
    %c0_i32_1 = arith.constant 0 : i32
    return %arg0, %c0_i32, %c0_i32_0 : i32, i32, i32
  }
  func.func @transform_1(%arg0: i32) -> (i32, i32, i32) {
    %c0_i32 = arith.constant 0 : i32
    %c0_i32_0 = arith.constant 0 : i32
    %c0_i32_1 = arith.constant 0 : i32
    return %arg0, %c0_i32, %c0_i32_0 : i32, i32, i32
  }
  func.func @transform_2(%arg0: i32) -> (i32, i32, i32) {
    %c0_i32 = arith.constant 0 : i32
    %c0_i32_0 = arith.constant 0 : i32
    %c0_i32_1 = arith.constant 0 : i32
    return %arg0, %c0_i32, %c0_i32_0 : i32, i32, i32
  }
  func.func @transform_3(%arg0: i32) -> (i32, i32, i32) {
    %c0_i32 = arith.constant 0 : i32
    %c0_i32_0 = arith.constant 0 : i32
    %c0_i32_1 = arith.constant 0 : i32
    return %arg0, %c0_i32, %c0_i32_0 : i32, i32, i32
  }
  func.func @transform_4(%arg0: i32) -> (i32, i32, i32) {
    %c0_i32 = arith.constant 0 : i32
    %c0_i32_0 = arith.constant 0 : i32
    %c0_i32_1 = arith.constant 0 : i32
    %c0_i32_2 = arith.constant 0 : i32
    return %c0_i32, %c0_i32_0, %c0_i32_1 : i32, i32, i32
  }
  func.func @transform_5(%arg0: i32) -> (i32, i32, i32) {
    %c0_i32 = arith.constant 0 : i32
    %c0_i32_0 = arith.constant 0 : i32
    %c0_i32_1 = arith.constant 0 : i32
    %c0_i32_2 = arith.constant 0 : i32
    return %c0_i32, %c0_i32_0, %c0_i32_1 : i32, i32, i32
  }
  func.func @transform_6(%arg0: i32) -> (i32, i32, i32) {
    %c0_i32 = arith.constant 0 : i32
    %c0_i32_0 = arith.constant 0 : i32
    %c0_i32_1 = arith.constant 0 : i32
    %c0_i32_2 = arith.constant 0 : i32
    return %c0_i32, %c0_i32_0, %c0_i32_1 : i32, i32, i32
  }
  func.func @transform_7(%arg0: i32) -> (i32, i32) {
    %c0_i32 = arith.constant 0 : i32
    %c0_i32_0 = arith.constant 0 : i32
    %c0_i32_1 = arith.constant 0 : i32
    return %c0_i32, %c0_i32_0 : i32, i32
  }
  func.func @transform_8(%arg0: i32) -> (i32, i32) {
    %c0_i32 = arith.constant 0 : i32
    %c0_i32_0 = arith.constant 0 : i32
    %c0_i32_1 = arith.constant 0 : i32
    return %c0_i32, %c0_i32_0 : i32, i32
  }
  func.func @transform_9(%arg0: i32) -> (i32, i32) {
    %c0_i32 = arith.constant 0 : i32
    %c0_i32_0 = arith.constant 0 : i32
    %c0_i32_1 = arith.constant 0 : i32
    return %c0_i32, %c0_i32_0 : i32, i32
  }
  func.func @transform_10(%arg0: i32) -> (i32, i32, i32) {
    %c0_i32 = arith.constant 0 : i32
    %c0_i32_0 = arith.constant 0 : i32
    %c0_i32_1 = arith.constant 0 : i32
    %c0_i32_2 = arith.constant 0 : i32
    return %c0_i32, %c0_i32_0, %c0_i32_1 : i32, i32, i32
  }
  func.func @transform_11(%arg0: i32) -> (i32, i32, i32) {
    %c0_i32 = arith.constant 0 : i32
    %c0_i32_0 = arith.constant 0 : i32
    %c0_i32_1 = arith.constant 0 : i32
    %c0_i32_2 = arith.constant 0 : i32
    return %c0_i32, %c0_i32_0, %c0_i32_1 : i32, i32, i32
  }
  func.func @transform_12(%arg0: i32) -> (i32, i32, i32) {
    %c0_i32 = arith.constant 0 : i32
    %c0_i32_0 = arith.constant 0 : i32
    %c0_i32_1 = arith.constant 0 : i32
    %c0_i32_2 = arith.constant 0 : i32
    return %c0_i32, %c0_i32_0, %c0_i32_1 : i32, i32, i32
  }
  func.func @transform_13(%arg0: i32) -> (i32, i32, i32) {
    %c0_i32 = arith.constant 0 : i32
    %c0_i32_0 = arith.constant 0 : i32
    %c0_i32_1 = arith.constant 0 : i32
    %c0_i32_2 = arith.constant 0 : i32
    return %c0_i32, %c0_i32_0, %c0_i32_1 : i32, i32, i32
  }
  func.func @transform_14(%arg0: i32) -> (i32, i32, i32) {
    %c0_i32 = arith.constant 0 : i32
    %c0_i32_0 = arith.constant 0 : i32
    %c0_i32_1 = arith.constant 0 : i32
    %c0_i32_2 = arith.constant 0 : i32
    return %c0_i32, %c0_i32_0, %c0_i32_1 : i32, i32, i32
  }
  func.func @transform_15(%arg0: i32) -> (i32, i32) {
    %c0_i32 = arith.constant 0 : i32
    %c0_i32_0 = arith.constant 0 : i32
    %c0_i32_1 = arith.constant 0 : i32
    return %c0_i32, %c0_i32_0 : i32, i32
  }
  func.func @transform_16(%arg0: i32) -> (i32, i32) {
    %c0_i32 = arith.constant 0 : i32
    %c0_i32_0 = arith.constant 0 : i32
    %c0_i32_1 = arith.constant 0 : i32
    return %c0_i32, %c0_i32_0 : i32, i32
  }
  func.func @transform_17(%arg0: i32) -> (i32, i32) {
    %c0_i32 = arith.constant 0 : i32
    %c0_i32_0 = arith.constant 0 : i32
    %c0_i32_1 = arith.constant 0 : i32
    return %c0_i32, %c0_i32_0 : i32, i32
  }
  func.func @transform_18(%arg0: i32) -> (i32, i32) {
    %c0_i32 = arith.constant 0 : i32
    %c0_i32_0 = arith.constant 0 : i32
    %c0_i32_1 = arith.constant 0 : i32
    return %c0_i32, %c0_i32_0 : i32, i32
  }
  func.func @transform_19(%arg0: i32) -> (i32, i32) {
    %c0_i32 = arith.constant 0 : i32
    %c0_i32_0 = arith.constant 0 : i32
    %c0_i32_1 = arith.constant 0 : i32
    return %c0_i32, %c0_i32_0 : i32, i32
  }
  func.func @transform_20(%arg0: i32) -> (i32, i32) {
    %c0_i32 = arith.constant 0 : i32
    %c0_i32_0 = arith.constant 0 : i32
    %c0_i32_1 = arith.constant 0 : i32
    return %c0_i32, %c0_i32_0 : i32, i32
  }
  func.func @transform_21(%arg0: i32) -> (i32, i32) {
    %c0_i32 = arith.constant 0 : i32
    %c0_i32_0 = arith.constant 0 : i32
    %c0_i32_1 = arith.constant 0 : i32
    return %c0_i32, %c0_i32_0 : i32, i32
  }
  func.func @transform_22(%arg0: i32) -> (i32, i32) {
    %c0_i32 = arith.constant 0 : i32
    %c0_i32_0 = arith.constant 0 : i32
    %c0_i32_1 = arith.constant 0 : i32
    return %c0_i32, %c0_i32_0 : i32, i32
  }
  func.func @transform_23(%arg0: i32) -> (i32, i32) {
    %c0_i32 = arith.constant 0 : i32
    %c0_i32_0 = arith.constant 0 : i32
    %c0_i32_1 = arith.constant 0 : i32
    return %c0_i32, %c0_i32_0 : i32, i32
  }
  func.func @transform_24(%arg0: i32) -> (i32, i32, i32) {
    %c0_i32 = arith.constant 0 : i32
    %c0_i32_0 = arith.constant 0 : i32
    %c0_i32_1 = arith.constant 0 : i32
    return %arg0, %c0_i32, %c0_i32_0 : i32, i32, i32
  }
}

</mosaic_0001>

<bundles_post_ra>
// kernel: tpu_custom_call.1
= control target key start
LH: loop header
LB: loop body
LE: loop exit
PB: predicated region body
PF: predicated region fallthrough
CT: control target
= control target key end

     0   :  { %s6922_s0 = inlined_call_operand.vmem [shape: f32[2,8,32], index: 0, kind: input, shape index: {}]   ;;  %s6923_s1 = inlined_call_operand.vmem [shape: f32[2,8,32], index: 1, kind: input, shape index: {}]   ;;  %s6924_s2 = inlined_call_operand.vmem [shape: f32[2,8,8], index: 2, kind: input, shape index: {}]   ;;  %s6925_s3 = inlined_call_operand.vmem [shape: f32[2,8,8], index: 3, kind: input, shape index: {}]   ;;  %s6926_s4 = inlined_call_operand.vmem [shape: f32[12,32,8], index: 4, kind: input, shape index: {}]   ;;  %s6927_s5 = inlined_call_operand.vmem [shape: f32[12,1,8], index: 5, kind: input, shape index: {}]   ;;  %s6928_s6 = inlined_call_operand.vmem [shape: f32[4,8,32], index: 6, kind: input, shape index: {}]   ;;  %s6929_s7 = inlined_call_operand.vmem [shape: f32[1,32], index: 7, kind: input, shape index: {}]   ;;  %s6930_s8 = inlined_call_operand.vmem [shape: f32[1,32], index: 8, kind: input, shape index: {}]   ;;  %s6931_s9 = inlined_call_operand.vmem [shape: f32[1,32], index: 9, kind: input, shape index: {}]   ;;  %s6932_s10 = inlined_call_operand.vmem [shape: f32[4,32,8], index: 10, kind: input, shape index: {}]   ;;  %s6933_s11 = inlined_call_operand.vmem [shape: f32[4,1,8], index: 11, kind: input, shape index: {}]   ;;  %s6934_s12 = inlined_call_operand.vmem [shape: f32[8,32,8], index: 12, kind: input, shape index: {}]   ;;  %s6935_s13 = inlined_call_operand.vmem [shape: f32[8,1,8], index: 13, kind: input, shape index: {}]   ;;  %s6936_s14 = inlined_call_operand.vmem [shape: f32[4,8,32], index: 14, kind: input, shape index: {}]   ;;  %s6937_s15 = inlined_call_operand.vmem [shape: f32[1,32], index: 15, kind: input, shape index: {}]   ;;  %s6938_s16 = inlined_call_operand.vmem [shape: f32[1,32], index: 16, kind: input, shape index: {}]   ;;  %s6939_s17 = inlined_call_operand.vmem [shape: f32[1,32], index: 17, kind: input, shape index: {}]   ;;  %s6940_s18 = inlined_call_operand.vmem [shape: f32[32,64], index: 18, kind: input, shape index: {}]   ;;  %s6941_s19 = inlined_call_operand.vmem [shape: f32[1,64], index: 19, kind: input, shape index: {}]   ;;  %s6942_s20 = inlined_call_operand.vmem [shape: f32[64,32], index: 20, kind: input, shape index: {}]   ;;  %s6943_s21 = inlined_call_operand.vmem [shape: f32[1,32], index: 21, kind: input, shape index: {}]   ;;  %s6944_s22 = inlined_call_operand.vmem [shape: f32[1,32], index: 22, kind: input, shape index: {}]   ;;  %s6945_s23 = inlined_call_operand.vmem [shape: f32[1,32], index: 23, kind: input, shape index: {}]   ;;  %s6946_s24 = inlined_call_operand.hbm [shape: f32[2,8,32], index: 24, kind: output, shape index: {}]  }
   0x1   :  { %6957 = sst [smem:[#allocation10_spill]] %s6922_s0 }
   0x2   :  { %6958 = sst [smem:[#allocation11_spill]] %s6923_s1 }
   0x3   :  { %6959 = sst [smem:[#allocation12_spill]] %s6924_s2 }
   0x4   :  { %6960 = sst [smem:[#allocation13_spill]] %s6925_s3 }
   0x5   :  { %6961 = sst [smem:[#allocation14_spill]] %s6926_s4 }
   0x6   :  { %6962 = sst [smem:[#allocation15_spill]] %s6927_s5 }
   0x7   :  { %6963 = sst [smem:[#allocation16_spill]] %s6928_s6 }
   0x8   :  { %6964 = sst [smem:[#allocation17_spill]] %s6929_s7 }
   0x9   :  { %6965 = sst [smem:[#allocation18_spill]] %s6930_s8 }
   0xa   :  { %6966 = sst [smem:[#allocation19_spill]] %s6931_s9 }
   0xb   :  { %6967 = sst [smem:[#allocation20_spill]] %s6932_s10 }
   0xc   :  { %6968 = sst [smem:[#allocation21_spill]] %s6933_s11 }
   0xd   :  { %29 = vsyncpa [#allocation3], 0 }
   0xe   :  { %31 = vsyncpa [#allocation3 + $0x1], 0  ;;  %s6006_s5 = smov 0   ;;  %s6008_s26 = smov 0  }
   0xf   :  { %s6010_s27 = smov 0   ;;  %s6012_s28 = smov 0  }
  0x10 LB: > { %6969 = sst [smem:[#allocation5_spill]] %s5864_s5  ;;  %s6027_s6 = sadd.s32 4294967295, %s5876_s28   ;;  %s5876_s28 = sphi %s6012_s28, %s6991_s28   ;;  %s5872_s27 = sphi %s6010_s27, %s6993_s27   ;;  %s5868_s26 = sphi %s6008_s26, %s6995_s26   ;;  %s5864_s5 = sphi %s6006_s5, %s6994_s5  }
  0x11   : > { %6970 = sst [smem:[#allocation6_spill]] %s5872_s27  ;;  %s5036_s2 = sadd.s32 4294967294, %s5876_s28  }
  0x12   : > { %s6031_s29 = sadd.s32 1, %s5876_s28   ;;  %s568_s0 = sadd.s32 1, %s5872_s27 }
  0x13   : > { %6971 = sst [smem:[#allocation7_spill]] %s6031_s29  ;;  %s565_s7 = ssub.s32 %s5876_s28, %s6031_s29 }
  0x14   : > { %p578_p0 = scmp.ne.s32.totalorder %s5872_s27, %s5868_s26  ;;  %p566_p1 = scmp.eq.s32.totalorder %s565_s7, 0 }
  0x15   : > { %p579_p2 = scmp.eq.s32.totalorder %s6027_s6, 1  ;;  %p584_p3 = scmp.ne.s32.totalorder %s5868_s26, %s5864_s5 }
  0x16   : > { %p585_p4 = scmp.eq.s32.totalorder %s5036_s2, 1  ;;  %p5039_p7 = scmp.ge.s32.totalorder %s5876_s28, 1 }
  0x17   : > { %s6042_s30 = scalar_select %p566_p1, %s5872_s27, %s568_s0  }
  0x18   : > { %p6044_p5 = por %p579_p2, %p578_p0  ;;  %p6048_p6 = por %p585_p4, %p584_p3 }
  0x19   : > { %6972 = sst [smem:[#allocation8_spill]] %s6042_s30  ;;  %p691_p8 = scmp.lt.s32.totalorder %s5876_s28, 3 }
  0x1a   : > { %s6974_s25 = scalar_select %p6048_p6, 1, 0 }
  0x1b   : > { %p692_p9 = pnand %p5039_p7, %p691_p8 }
  0x1c   : > { %6975 = sst [smem:[#allocation9_spill]] %s6974_s25  ;;  %p768_p10 = scmp.lt.s32.totalorder (!%p692_p9), %s6027_s6, 1 }
  0x1d   : > { %695 = sbr.rel (%p692_p9) target bundleno = 3641 (0xe39), region = 116  ;;  %s6976_s1 = sld [smem:[#allocation14_spill]] (!%p692_p9) }
  0x1e   : > { %s6977_s2 = sld [smem:[#allocation10_spill]] (!%p692_p9)  ;;  %s5138_s4 = sshll.u32 (!%p692_p9), %s6027_s6, 7 }
  0x1f   : > { %s6978_s27 = sld [smem:[#allocation15_spill]] (!%p692_p9) }
  0x20   : > { %s6980_s25 = sld [smem:[#allocation12_spill]] (!%p692_p9) }
  0x21   : > { %s6983_s10 = sld [smem:[#allocation20_spill]] (!%p692_p9) }
  0x22   : > { %v5878_v2 = vmov 0.0   ;;  %s769_s8 = scalar_select %p768_p10, %s6027_s6, 1  ;;  %vm920_vm0 = vcmask 261120   ;;  %vm5879_vm1 = vmmov 0   ;;  %vm1769_vm2 = vcmask 64512  }
  0x23   : > { %v791_v0 = vld [vmem:[%s6976_s1 + $0x18] sm:$0xff]  ;;  %5323 = vmatprep.subr.mxu0 %v5878_v2  ;;  %5334 = vmatprep.subr.mxu1 %v5878_v2  ;;  %v790_v3 = vld [vmem:[%s6976_s1 + $0x10] sm:$0xff]  ;;  %v789_v5 = vld [vmem:[%s6976_s1 + $0x8] sm:$0xff]  ;;  %s6984_s7 = sld [smem:[#allocation18_spill]]  ;;  %vm4822_vm3 = vcmask 523264  }
  0x24   : > { %v795_v1 = vld [vmem:[%s6976_s1 + $0x38] sm:$0xff]  ;;  %v794_v4 = vld [vmem:[%s6976_s1 + $0x30] sm:$0xff]  ;;  %5324 = vmatpush3.msra.mxu0 %v791_v0  ;;  %v793_v6 = vld [vmem:[%s6976_s1 + $0x28] sm:$0xff]  ;;  %s6078_s30 = sshll.u32 %s769_s8, 3  ;;  %5331 = vmatprep.mubr.msk.f32.mxu0 %vm5879_vm1, %v5878_v2  ;;  %s6982_s8 = sld [smem:[#allocation17_spill]] }
  0x25   : > { %5335 = vmatpush3.msra.mxu1 %v795_v1  ;;  %5325 = vmatprep.subr.mxu0 %v5878_v2  ;;  %v788_v7 = vld [vmem:[%s6976_s1] sm:$0xff]  ;;  %s771_s5 = scalar_lea.vmem %s6977_s2, %s6078_s30  ;;  %v799_v10 = vld [vmem:[%s6976_s1 + $0x58] sm:$0xff]  ;;  %v798_v12 = vld [vmem:[%s6976_s1 + $0x50] sm:$0xff]  ;;  %s6979_s29 = smov %s6978_s27 }
  0x26   : > { %5336 = vmatprep.subr.mxu1 %v5878_v2  ;;  %5326 = vmatpush3.msra.mxu0 %v790_v3  ;;  %v792_v8 = vld [vmem:[%s6976_s1 + $0x20] sm:$0xff]  ;;  %v803_v11 = vld [vmem:[%s6976_s1 + $0x78] sm:$0xff]  ;;  %v802_v13 = vld [vmem:[%s6976_s1 + $0x70] sm:$0xff]  ;;  %s779_s0 = scalar_lea.vmem %s6980_s25, %s6078_s30  ;;  %s6981_s25 = sld [smem:[#allocation16_spill]] }
  0x27   : > { %5337 = vmatpush3.msra.mxu1 %v794_v4  ;;  %5327 = vmatprep.subr.mxu0 %v5878_v2  ;;  %v6092_v9 = vld [vmem:[%s771_s5] sm:$0xff]  ;;  %v797_v14 = vld [vmem:[%s6976_s1 + $0x48] sm:$0xff]  ;;  %v807_v18 = vld [vmem:[%s6976_s1 + $0x98] sm:$0xff]  ;;  %s6985_s9 = sld [smem:[#allocation19_spill]] }
  0x28   : > { %5338 = vmatprep.subr.mxu1 %v5878_v2  ;;  %5328 = vmatpush3.msra.mxu0 %v789_v5  ;;  %v801_v15 = vld [vmem:[%s6976_s1 + $0x68] sm:$0xff]  ;;  %v796_v16 = vld [vmem:[%s6976_s1 + $0x40] sm:$0xff]  ;;  %v811_v19 = vld [vmem:[%s6976_s1 + $0xb8] sm:$0xff]  ;;  %s6987_s11 = sld [smem:[#allocation21_spill]] }
  0x29   : > { %5339 = vmatpush3.msra.mxu1 %v793_v6  ;;  %5329 = vmatprep.subr.mxu0 %v5878_v2  ;;  %v800_v17 = vld [vmem:[%s6976_s1 + $0x60] sm:$0xff]  ;;  %v806_v20 = vld [vmem:[%s6976_s1 + $0x90] sm:$0xff]  ;;  %v805_v22 = vld [vmem:[%s6976_s1 + $0x88] sm:$0xff] }
  0x2a   : > { %5340 = vmatprep.subr.mxu1 %v5878_v2  ;;  %5330 = vmatpush3.msra.mxu0 %v788_v7  ;;  %v810_v21 = vld [vmem:[%s6976_s1 + $0xb0] sm:$0xff]  ;;  %v809_v23 = vld [vmem:[%s6976_s1 + $0xa8] sm:$0xff]  ;;  %v804_v24 = vld [vmem:[%s6976_s1 + $0x80] sm:$0xff] }
  0x2b   : > { %5341 = vmatpush3.msra.mxu1 %v792_v8  ;;  %5332 = vmatmul.mubr.msk.f32.vlgmr.msra.gmra.mxu0 %vm920_vm0, %v6092_v9  ;;  %v808_v25 = vld [vmem:[%s6976_s1 + $0xa0] sm:$0xff]  ;;  %v815_v26 = vld [vmem:[%s6976_s1 + $0xd8] sm:$0xff]  ;;  %v814_v28 = vld [vmem:[%s6976_s1 + $0xd0] sm:$0xff] }
  0x2c   : > { %5342 = vmatprep.mubr.msk.f32.mxu1 %vm5879_vm1, %v5878_v2  ;;  %5345 = vmatprep.subr.mxu0 %v5878_v2  ;;  %v819_v27 = vld [vmem:[%s6976_s1 + $0xf8] sm:$0xff]  ;;  %v818_v29 = vld [vmem:[%s6976_s1 + $0xf0] sm:$0xff]  ;;  %v813_v30 = vld [vmem:[%s6976_s1 + $0xc8] sm:$0xff] }
  0x2d   : > { %5356 = vmatprep.subr.mxu1 %v5878_v2  ;;  %5343 = vmatmul.mubr.msk.f32.vlgmr.msra.gmra.mxu1 %vm920_vm0, %v6092_v9  ;;  %v817_v31 = vld [vmem:[%s6976_s1 + $0xe8] sm:$0xff]  ;;  %v812_v32 = vld [vmem:[%s6976_s1 + $0xc0] sm:$0xff]  ;;  %v823_v34 = vld [vmem:[%s6976_s1 + $0x118] sm:$0xff] }
  0x2e   : > { %5346 = vmatpush3.msra.mxu0 %v799_v10  ;;  %5357 = vmatpush3.msra.mxu1 %v803_v11  ;;  %v816_v33 = vld [vmem:[%s6976_s1 + $0xe0] sm:$0xff]  ;;  %v822_v35 = vld [vmem:[%s6976_s1 + $0x110] sm:$0xff]  ;;  %v821_v36 = vld [vmem:[%s6976_s1 + $0x108] sm:$0xff] }
  0x2f   : > { %5347 = vmatprep.subr.mxu0 %v5878_v2  ;;  %5358 = vmatprep.subr.mxu1 %v5878_v2  ;;  %v820_v37 = vld [vmem:[%s6976_s1 + $0x100] sm:$0xff]  ;;  %v831_v38 = vld [vmem:[%s6976_s1 + $0x158] sm:$0xff]  ;;  %v830_v40 = vld [vmem:[%s6976_s1 + $0x150] sm:$0xff] }
  0x30   : > { %5348 = vmatpush3.msra.mxu0 %v798_v12  ;;  %5359 = vmatpush3.msra.mxu1 %v802_v13  ;;  %v827_v39 = vld [vmem:[%s6976_s1 + $0x138] sm:$0xff]  ;;  %v826_v41 = vld [vmem:[%s6976_s1 + $0x130] sm:$0xff]  ;;  %v829_v42 = vld [vmem:[%s6976_s1 + $0x148] sm:$0xff] }
  0x31   : > { %5349 = vmatprep.subr.mxu0 %v5878_v2  ;;  %5360 = vmatprep.subr.mxu1 %v5878_v2  ;;  %v825_v43 = vld [vmem:[%s6976_s1 + $0x128] sm:$0xff]  ;;  %v828_v44 = vld [vmem:[%s6976_s1 + $0x140] sm:$0xff]  ;;  %v835_v46 = vld [vmem:[%s6976_s1 + $0x178] sm:$0xff] }
  0x32   : > { %5350 = vmatpush3.msra.mxu0 %v797_v14  ;;  %5361 = vmatpush3.msra.mxu1 %v801_v15  ;;  %v824_v45 = vld [vmem:[%s6976_s1 + $0x120] sm:$0xff]  ;;  %v834_v47 = vld [vmem:[%s6976_s1 + $0x170] sm:$0xff]  ;;  %v833_v48 = vld [vmem:[%s6976_s1 + $0x168] sm:$0xff] }
  0x33   : > { %5351 = vmatprep.subr.mxu0 %v5878_v2  ;;  %5362 = vmatprep.subr.mxu1 %v5878_v2  ;;  %v832_v49 = vld [vmem:[%s6976_s1 + $0x160] sm:$0xff] }
  0x34   : > { %5352 = vmatpush3.msra.mxu0 %v796_v16  ;;  %5353 = vmatprep.mubr.msk.f32.mxu0 %vm5879_vm1, %v5878_v2  ;;  %v5049_v58 = vld [vmem:[%s6978_s27 + $0x4] ss:$0 sm:$0xff]  ;;  %v5050_v60 = vld [vmem:[%s6979_s29 + $0x5] ss:$0 sm:$0xff]  ;;  %v5045_v61 = vld [vmem:[%s6979_s29] ss:$0 sm:$0xff] }
  0x35   : > { %5363 = vmatpush3.msra.mxu1 %v800_v17  ;;  %5354 = vmatmul.mubr.msk.f32.vlgmr.msra.gmra.mxu0 %vm920_vm0, %v6092_v9  ;;  %v5046_v5 = vld [vmem:[%s6979_s29 + $0x1] ss:$0 sm:$0xff]  ;;  %v5051_v7 = vld [vmem:[%s6979_s29 + $0x6] ss:$0 sm:$0xff]  ;;  %v5052_v8 = vld [vmem:[%s6979_s29 + $0x7] ss:$0 sm:$0xff] }
  0x36   : > { %5364 = vmatprep.mubr.msk.f32.mxu1 %vm5879_vm1, %v5878_v2  ;;  %5367 = vmatprep.subr.mxu0 %v5878_v2  ;;  %v5047_v12 = vld [vmem:[%s6979_s29 + $0x2] ss:$0 sm:$0xff]  ;;  %v5048_v13 = vld [vmem:[%s6979_s29 + $0x3] ss:$0 sm:$0xff] }
  0x37   : > { %5378 = vmatprep.subr.mxu1 %v5878_v2  ;;  %5365 = vmatmul.mubr.msk.f32.vlgmr.msra.gmra.mxu1 %vm920_vm0, %v6092_v9 }
  0x38   : > { %5368 = vmatpush3.msra.mxu0 %v807_v18  ;;  %5379 = vmatpush3.msra.mxu1 %v811_v19 }
  0x39   : > { %5369 = vmatprep.subr.mxu0 %v5878_v2  ;;  %5380 = vmatprep.subr.mxu1 %v5878_v2 }
  0x3a   : > { %5370 = vmatpush3.msra.mxu0 %v806_v20  ;;  %5381 = vmatpush3.msra.mxu1 %v810_v21  ;;  %v5053_v20 = vld [vmem:[%s6979_s29 + $0x8] ss:$0 sm:$0xff] }
  0x3b   : > { %5371 = vmatprep.subr.mxu0 %v5878_v2  ;;  %5382 = vmatprep.subr.mxu1 %v5878_v2 }
  0x3c   : > { %5372 = vmatpush3.msra.mxu0 %v805_v22  ;;  %5383 = vmatpush3.msra.mxu1 %v809_v23 }
  0x3d   : > { %5373 = vmatprep.subr.mxu0 %v5878_v2  ;;  %5384 = vmatprep.subr.mxu1 %v5878_v2 }
  0x3e   : > { %5374 = vmatpush3.msra.mxu0 %v804_v24  ;;  %5375 = vmatprep.mubr.msk.f32.mxu0 %vm5879_vm1, %v5878_v2 }
  0x3f   : > { %5385 = vmatpush3.msra.mxu1 %v808_v25  ;;  %5376 = vmatmul.mubr.msk.f32.vlgmr.msra.gmra.mxu0 %vm920_vm0, %v6092_v9 }
  0x40   : > { %5386 = vmatprep.mubr.msk.f32.mxu1 %vm5879_vm1, %v5878_v2  ;;  %5389 = vmatprep.subr.mxu0 %v5878_v2 }
  0x41   : > { %5400 = vmatprep.subr.mxu1 %v5878_v2  ;;  %5387 = vmatmul.mubr.msk.f32.vlgmr.msra.gmra.mxu1 %vm920_vm0, %v6092_v9 }
  0x42   : > { %5390 = vmatpush3.msra.mxu0 %v815_v26  ;;  %5401 = vmatpush3.msra.mxu1 %v819_v27  ;;  %v5054_v26 = vld [vmem:[%s6979_s29 + $0x9] ss:$0 sm:$0xff] }
  0x43   : > { %5391 = vmatprep.subr.mxu0 %v5878_v2  ;;  %5402 = vmatprep.subr.mxu1 %v5878_v2 }
  0x44   : > { %5392 = vmatpush3.msra.mxu0 %v814_v28  ;;  %5403 = vmatpush3.msra.mxu1 %v818_v29 }
  0x45   : > { %5393 = vmatprep.subr.mxu0 %v5878_v2  ;;  %5404 = vmatprep.subr.mxu1 %v5878_v2 }
  0x46   : > { %5394 = vmatpush3.msra.mxu0 %v813_v30  ;;  %5405 = vmatpush3.msra.mxu1 %v817_v31 }
  0x47   : > { %5395 = vmatprep.subr.mxu0 %v5878_v2  ;;  %5406 = vmatprep.subr.mxu1 %v5878_v2 }
  0x48   : > { %5396 = vmatpush3.msra.mxu0 %v812_v32  ;;  %5397 = vmatprep.mubr.msk.f32.mxu0 %vm5879_vm1, %v5878_v2 }
  0x49   : > { %5407 = vmatpush3.msra.mxu1 %v816_v33  ;;  %5408 = vmatprep.mubr.msk.f32.mxu1 %vm5879_vm1, %v5878_v2  ;;  %v786_v33 = vld [vmem:[%s779_s0] sm:$0xff]  ;;  %s765_s0 = sand.u32 1, %s5868_s26  }
  0x4a   : > { %5398 = vmatmul.mubr.msk.f32.vlgmr.msra.gmra.mxu0 %vm920_vm0, %v6092_v9  ;;  %5409 = vmatmul.mubr.msk.f32.vlgmr.msra.gmra.mxu1 %vm920_vm0, %v6092_v9  ;;  %s5040_s1 = sshll.u32 %s765_s0, 3 }
  0x4b   : > { %5411 = vmatprep.subr.mxu0 %v5878_v2  ;;  %5419 = vmatprep.mubr.msk.f32.mxu0 %vm5879_vm1, %v5878_v2 }
  0x4c   : > { %5422 = vmatprep.subr.mxu1 %v5878_v2  ;;  %5430 = vmatprep.mubr.msk.f32.mxu1 %vm5879_vm1, %v5878_v2 }
  0x4d   : > { %5412 = vmatpush3.msra.mxu0 %v823_v34  ;;  %5423 = vmatpush3.msra.mxu1 %v827_v39 }
  0x4e   : > { %5413 = vmatprep.subr.mxu0 %v5878_v2  ;;  %5424 = vmatprep.subr.mxu1 %v5878_v2 }
  0x4f   : > { %5414 = vmatpush3.msra.mxu0 %v822_v35  ;;  %5425 = vmatpush3.msra.mxu1 %v826_v41 }
  0x50   : > { %5415 = vmatprep.subr.mxu0 %v5878_v2  ;;  %5426 = vmatprep.subr.mxu1 %v5878_v2 }
  0x51   : > { %5416 = vmatpush3.msra.mxu0 %v821_v36  ;;  %5427 = vmatpush3.msra.mxu1 %v825_v43 }
  0x52   : > { %5417 = vmatprep.subr.mxu0 %v5878_v2  ;;  %5428 = vmatprep.subr.mxu1 %v5878_v2 }
  0x53   : > { %5418 = vmatpush3.msra.mxu0 %v820_v37  ;;  %5429 = vmatpush3.msra.mxu1 %v824_v45 }
  0x54   : > { %5433 = vmatprep.subr.mxu0 %v5878_v2  ;;  %5420 = vmatmul.mubr.msk.f32.vlgmr.msra.gmra.mxu0 %vm920_vm0, %v6092_v9 }
  0x55   : > { %5441 = vmatprep.mubr.msk.f32.mxu0 %vm5879_vm1, %v5878_v2  ;;  %5434 = vmatpush3.msra.mxu0 %v831_v38 }
  0x56   : > { %5435 = vmatprep.subr.mxu0 %v5878_v2  ;;  %5444 = vmatprep.subr.mxu1 %v5878_v2 }
  0x57   : > { %5436 = vmatpush3.msra.mxu0 %v830_v40  ;;  %5431 = vmatmul.mubr.msk.f32.vlgmr.msra.gmra.mxu1 %vm920_vm0, %v6092_v9 }
  0x58   : > { %5437 = vmatprep.subr.mxu0 %v5878_v2  ;;  %5445 = vmatpush3.msra.mxu1 %v835_v46 }
  0x59   : > { %5438 = vmatpush3.msra.mxu0 %v829_v42  ;;  %5452 = vmatprep.mubr.msk.f32.mxu1 %vm5879_vm1, %v5878_v2 }
  0x5a   : > { %5439 = vmatprep.subr.mxu0 %v5878_v2  ;;  %5446 = vmatprep.subr.mxu1 %v5878_v2 }
  0x5b   : > { %5440 = vmatpush3.msra.mxu0 %v828_v44  ;;  %5447 = vmatpush3.msra.mxu1 %v834_v47 }
  0x5c   : > { %5442 = vmatmul.mubr.msk.f32.vlgmr.msra.gmra.mxu0 %vm920_vm0, %v6092_v9  ;;  %5455 = vmatprep.subr.mxu0 %v5878_v2 }
  0x5d   : > { %5457 = vmatprep.mubr.msk.f32.mxu0 %vm5879_vm1, %v5878_v2  ;;  %5448 = vmatprep.subr.mxu1 %v5878_v2 }
  0x5e   : > { %5449 = vmatpush3.msra.mxu1 %v833_v48 }
  0x5f   : > { %5450 = vmatprep.subr.mxu1 %v5878_v2 }
  0x60   : > { %5451 = vmatpush3.msra.mxu1 %v832_v49 }
  0x61   : > { %5453 = vmatmul.mubr.msk.f32.vlgmr.msra.gmra.mxu1 %vm920_vm0, %v6092_v9  ;;  %5470 = vmatprep.subr.mxu1 %v5878_v2 }
  0x62   : > { %5472 = vmatprep.mubr.msk.f32.mxu1 %vm5879_vm1, %v5878_v2 }
  0xeb   : > { %v990_v50 = vpop.f32.mrf.mxu0 }
  0xec   : > { %v991_v3 = vadd.f32 %v5045_v61, %v990_v50 }
  0xed   : > { %v5333_v51 = vpop.f32.mrf.mxu0  ;;  %v1060_v52 = vpop.f32.mrf.mxu1 }
  0xee   : > { %v1061_v6 = vadd.f32 %v5046_v5, %v1060_v52 }
  0xef   : > { %v5344_v53 = vpop.f32.mrf.mxu1 }
  0xf5   : > { %v1130_v54 = vpop.f32.mrf.mxu0 }
  0xf6   : > { %v1131_v18 = vadd.f32 %v5047_v12, %v1130_v54 }
  0xf7   : > { %v5355_v55 = vpop.f32.mrf.mxu0  ;;  %v1200_v56 = vpop.f32.mrf.mxu1 }
  0xf8   : > { %v1201_v19 = vadd.f32 %v5048_v13, %v1200_v56 }
  0xf9   : > { %v5366_v57 = vpop.f32.mrf.mxu1 }
  0xff   : > { %v1270_v59 = vpop.f32.mrf.mxu0 }
 0x100   : > { %v1271_v62 = vadd.f32 %v5049_v58, %v1270_v59 }
 0x101   : > { %v5377_v63 = vpop.f32.mrf.mxu0  ;;  %v1340_v0 = vpop.f32.mrf.mxu1 }
 0x102   : > { %v1341_v1 = vadd.f32 %v5050_v60, %v1340_v0  ;;  %5456 = vmatpush3.xpose.msk.msra.mxu0 %vm1769_vm2, %v1271_v62 }
 0x103   : > { %v5388_v4 = vpop.f32.mrf.mxu1  ;;  %5460 = vmatprep.subr.mxu0 %v5878_v2 }
 0x105   : > { %5458 = vmatmul.mubr.msk.f32.vlgmr.msra.gmra.mxu0 %vm1769_vm2, %v991_v3 }
 0x106   : > { %5461 = vmatpush3.xpose.msk.msra.mxu0 %vm1769_vm2, %v1341_v1  ;;  %5462 = vmatprep.mubr.msk.f32.mxu0 %vm5879_vm1, %v5878_v2 }
 0x107   : > { %5465 = vmatprep.subr.mxu0 %v5878_v2 }
 0x109   : > { %5463 = vmatmul.mubr.msk.f32.vlgmr.msra.gmra.mxu0 %vm1769_vm2, %v1061_v6 }
 0x10a   : > { %v1410_v10 = vpop.f32.mrf.mxu0  ;;  %v1480_v11 = vpop.f32.mrf.mxu1  ;;  %5467 = vmatprep.mubr.msk.f32.mxu0 %vm5879_vm1, %v5878_v2 }
 0x10b   : > { %v1411_v14 = vadd.f32 %v5051_v7, %v1410_v10  ;;  %v1481_v15 = vadd.f32 %v5052_v8, %v1480_v11 }
 0x10c   : > { %v5399_v16 = vpop.f32.mrf.mxu0  ;;  %v5410_v17 = vpop.f32.mrf.mxu1 }
 0x10d   : > { %5466 = vmatpush3.xpose.msk.msra.mxu0 %vm1769_vm2, %v1411_v14  ;;  %5471 = vmatpush3.xpose.msk.msra.mxu1 %vm1769_vm2, %v1481_v15  ;;  %v5055_v14 = vld [vmem:[%s6979_s29 + $0xa] ss:$0 sm:$0xff] }
 0x10e   : > { %5475 = vmatprep.subr.mxu0 %v5878_v2  ;;  %5480 = vmatprep.subr.mxu1 %v5878_v2 }
 0x110   : > { %5468 = vmatmul.mubr.msk.f32.vlgmr.msra.gmra.mxu0 %vm1769_vm2, %v1131_v18  ;;  %5473 = vmatmul.mubr.msk.f32.vlgmr.msra.gmra.mxu1 %vm1769_vm2, %v1201_v19  ;;  %v5056_v19 = vld [vmem:[%s6979_s29 + $0xb] ss:$0 sm:$0xff] }
 0x111   : > { %5477 = vmatprep.mubr.msk.f32.mxu0 %vm5879_vm1, %v5878_v2  ;;  %5482 = vmatprep.mubr.msk.f32.mxu1 %vm5879_vm1, %v5878_v2 }
 0x114   : > { %v1550_v21 = vpop.f32.mrf.mxu0 }
 0x115   : > { %v1551_v22 = vadd.f32 %v5053_v20, %v1550_v21 }
 0x116   : > { %v5421_v23 = vpop.f32.mrf.mxu0 }
 0x117   : > { %5476 = vmatpush3.msra.mxu0 %v1551_v22  ;;  %v1620_v27 = vpop.f32.mrf.mxu1 }
 0x118   : > { %5485 = vmatprep.subr.mxu0 %v5878_v2  ;;  %v1621_v28 = vadd.f32 %v5054_v26, %v1620_v27  ;;  %v1764_v27 = vld [vmem:[%s6981_s25] sm:$0xff] }
 0x119   : > { %v5432_v29 = vpop.f32.mrf.mxu1 }
 0x11a   : > { %5481 = vmatpush3.msra.mxu1 %v1621_v28  ;;  %v1765_v28 = vld [vmem:[%s6981_s25 + $0x8] sm:$0xff]  ;;  %v1766_v29 = vld [vmem:[%s6981_s25 + $0x10] sm:$0xff] }
 0x11b   : > { %5490 = vmatprep.subr.mxu1 %v5878_v2 }
 0x11c   : > { %v6358_v24 = vpop.f32.mrf.mxu0 }
 0x11d   : > { %v1691_v18 = vadd.f32 %v5055_v14, %v6358_v24  ;;  %v5087_v14 = vld [vmem:[%s6985_s9] ss:$0 sm:$0xff]  ;;  %s6988_s9 = sld [smem:[#allocation13_spill]] }
 0x11e   : > { %v5443_v25 = vpop.f32.mrf.mxu0 }
 0x121   : > { %v6364_v30 = vpop.f32.mrf.mxu1 }
 0x122   : > { %v1761_v22 = vadd.f32 %v5056_v19, %v6364_v30  ;;  %v2765_v19 = vld [vmem:[%s6983_s10 + $0x50] sm:$0xff] }
 0x123   : > { %v5454_v31 = vpop.f32.mrf.mxu1 }
 0x1c5   : > { %v1842_v32 = vpop.f32.mrf.mxu0 }
 0x1c6   : > { %v2074_v34 = vmul.f32 0.35355338, %v1842_v32  ;;  %v1767_v32 = vld [vmem:[%s6981_s25 + $0x18] sm:$0xff]  ;;  %s783_s25 = scalar_lea.vmem %s6988_s9, %s6078_s30  ;;  %s767_s9 = scalar_lea.vmem [#allocation2], %s5040_s1 }
 0x1c7   : > { %v5459_v35 = vpop.f32.mrf.mxu0 }
 0x1c8   : > { %v2078_v36 = vadd.f32 %v2074_v34, %v786_v33 }
 0x1c9   : > { %v1918_v37 = vpop.f32.mrf.mxu0 }
 0x1ca   : > { %v2075_v38 = vmul.f32 0.35355338, %v1918_v37  ;;  %v2082_v39 = vsel %vm1769_vm2, %v2078_v36, -inf }
 0x1cb   : > { %2083 = vmax.xlane.f32.xlu0 %v2082_v39  ;;  %v5464_v40 = vpop.f32.mrf.mxu0 }
 0x1cc   : > { %v2079_v41 = vadd.f32 %v2075_v38, %v786_v33 }
 0x1ce   : > { %v2085_v42 = vsel %vm1769_vm2, %v2079_v41, -inf }
 0x1cf   : > { %2086 = vmax.xlane.f32.xlu0 %v2085_v42 }
 0x1d0   : > { %v1994_v43 = vpop.f32.mrf.mxu0  ;;  %v2070_v44 = vpop.f32.mrf.mxu1 }
 0x1d1   : > { %v2076_v45 = vmul.f32 0.35355338, %v1994_v43  ;;  %v2077_v46 = vmul.f32 0.35355338, %v2070_v44 }
 0x1d2   : > { %v5474_v47 = vpop.f32.mrf.mxu1  ;;  %v5469_v48 = vpop.f32.mrf.mxu0 }
 0x1d3   : > { %v2080_v49 = vadd.f32 %v2076_v45, %v786_v33  ;;  %v2081_v51 = vadd.f32 %v2077_v46, %v786_v33 }
 0x1d5   : > { %v2088_v50 = vsel %vm1769_vm2, %v2080_v49, -inf  ;;  %v2091_v52 = vsel %vm1769_vm2, %v2081_v51, -inf }
 0x1d6   : > { %2089 = vmax.xlane.f32.xlu1 %v2088_v50 }
 0x1da   : > { %2092 = vmax.xlane.f32.xlu1 %v2091_v52 }
 0x254   : > { %v2084_v53 = vpop.xlane.xlu0 %2083 }
 0x255   : > { %v2094_v54 = vsub.f32 %v2078_v36, %v2084_v53 }
 0x257   : > { %v2098_v55 = vmul.f32 1.442695, %v2094_v54 }
 0x258   : > { %v2087_v56 = vpop.xlane.xlu0 %2086 }
 0x259   : > { %5778 = vpow2.f32 %v2098_v55  ;;  %v2095_v57 = vsub.f32 %v2079_v41, %v2087_v56 }
 0x25b   : > { %v2100_v58 = vmul.f32 1.442695, %v2095_v57 }
 0x25d   : > { %5780 = vpow2.f32 %v2100_v58 }
 0x25f   : > { %v2090_v59 = vpop.xlane.xlu1 %2089 }
 0x260   : > { %v2096_v60 = vsub.f32 %v2080_v49, %v2090_v59 }
 0x262   : > { %v2102_v61 = vmul.f32 1.442695, %v2096_v60 }
 0x263   : > { %v2093_v62 = vpop.xlane.xlu1 %2092 }
 0x264   : > { %5782 = vpow2.f32 %v2102_v61  ;;  %v2097_v63 = vsub.f32 %v2081_v51, %v2093_v62  ;;  %v5085_v51 = vld [vmem:[%s6982_s8] ss:$0 sm:$0xff]  ;;  %s6986_s8 = sld [smem:[#allocation11_spill]] }
 0x266   : > { %v5779_v0 = vpop.eup %5778  ;;  %v2104_v1 = vmul.f32 1.442695, %v2097_v63  ;;  %v2758_v63 = vld [vmem:[%s6983_s10 + $0x18] sm:$0xff] }
 0x267   : > { %v2106_v3 = vsel %vm1769_vm2, %v5779_v0, 0.0 }
 0x268   : > { %5784 = vpow2.f32 %v2104_v1  ;;  %2107 = vadd.xlane.f32.xlu0 %v2106_v3  ;;  %v2761_v1 = vld [vmem:[%s6983_s10 + $0x30] sm:$0xff]  ;;  %v2756_v3 = vld [vmem:[%s6983_s10 + $0x8] sm:$0xff] }
 0x26a   : > { %v5781_v4 = vpop.eup %5780  ;;  %s775_s27 = scalar_lea.vmem %s6986_s8, %s6078_s30 }
 0x26b   : > { %v2109_v5 = vsel %vm1769_vm2, %v5781_v4, 0.0 }
 0x26c   : > { %2110 = vadd.xlane.f32.xlu1 %v2109_v5  ;;  %v2755_v5 = vld [vmem:[%s6983_s10] sm:$0xff] }
 0x271   : > { %v5783_v6 = vpop.eup %5782 }
 0x272   : > { %v2112_v7 = vsel %vm1769_vm2, %v5783_v6, 0.0 }
 0x273   : > { %2113 = vadd.xlane.f32.xlu0 %v2112_v7 }
 0x275   : > { %v5785_v8 = vpop.eup %5784 }
 0x276   : > { %v2115_v10 = vsel %vm1769_vm2, %v5785_v8, 0.0 }
 0x277   : > { %2116 = vadd.xlane.f32.xlu1 %v2115_v10 }
 0x2f1   : > { %v2108_v11 = vpop.xlane.xlu0 %2107 }
 0x2f2   : > { %5786 = vrcp.f32 %v2108_v11 }
 0x2f5   : > { %v2111_v12 = vpop.xlane.xlu1 %2110 }
 0x2f6   : > { %5788 = vrcp.f32 %v2111_v12  ;;  %v5086_v12 = vld [vmem:[%s6984_s7] ss:$0 sm:$0xff] }
 0x2fc   : > { %v2114_v13 = vpop.xlane.xlu0 %2113 }
 0x2fd   : > { %5790 = vrcp.f32 %v2114_v13 }
 0x2ff   : > { %v5787_v15 = vpop.eup %5786 }
 0x300   : > { %v2117_v16 = vpop.xlane.xlu1 %2116  ;;  %v2122_v17 = vmul.f32 %v5787_v15, %v5779_v0  ;;  %v2762_v0 = vld [vmem:[%s6983_s10 + $0x38] sm:$0xff] }
 0x301   : > { %5792 = vrcp.f32 %v2117_v16 }
 0x302   : > { %5478 = vmatmul.mubr.msk.f32.vlgmr.msra.gmra.mxu0 %vm1769_vm2, %v2122_v17  ;;  %v2766_v17 = vld [vmem:[%s6983_s10 + $0x58] sm:$0xff] }
 0x303   : > { %v5789_v20 = vpop.eup %5788  ;;  %5486 = vmatpush3.msra.mxu0 %v1691_v18  ;;  %5487 = vmatprep.mubr.msk.f32.mxu0 %vm5879_vm1, %v5878_v2  ;;  %v2770_v18 = vld [vmem:[%s6983_s10 + $0x78] sm:$0xff] }
 0x304   : > { %v2123_v21 = vmul.f32 %v5789_v20, %v5781_v4  ;;  %5495 = vmatprep.subr.mxu0 %v5878_v2  ;;  %v2760_v4 = vld [vmem:[%s6983_s10 + $0x28] sm:$0xff]  ;;  %v2769_v20 = vld [vmem:[%s6983_s10 + $0x70] sm:$0xff] }
 0x306   : > { %5483 = vmatmul.mubr.msk.f32.vlgmr.msra.gmra.mxu1 %vm1769_vm2, %v2123_v21  ;;  %v2764_v21 = vld [vmem:[%s6983_s10 + $0x48] sm:$0xff] }
 0x307   : > { %5491 = vmatpush3.msra.mxu1 %v1761_v22  ;;  %5492 = vmatprep.mubr.msk.f32.mxu1 %vm5879_vm1, %v5878_v2  ;;  %v2768_v22 = vld [vmem:[%s6983_s10 + $0x68] sm:$0xff] }
 0x308   : > { %5500 = vmatprep.subr.mxu1 %v5878_v2 }
 0x30a   : > { %v5791_v23 = vpop.eup %5790 }
 0x30b   : > { %v2124_v24 = vmul.f32 %v5791_v23, %v5783_v6  ;;  %v2759_v6 = vld [vmem:[%s6983_s10 + $0x20] sm:$0xff] }
 0x30c   : > { %v2763_v23 = vld [vmem:[%s6983_s10 + $0x40] sm:$0xff] }
 0x30d   : > { %5488 = vmatmul.mubr.msk.f32.vlgmr.msra.gmra.mxu0 %vm1769_vm2, %v2124_v24  ;;  %v2767_v24 = vld [vmem:[%s6983_s10 + $0x60] sm:$0xff] }
 0x30e   : > { %v5793_v25 = vpop.eup %5792  ;;  %5497 = vmatprep.mubr.msk.f32.mxu0 %vm5879_vm1, %v5878_v2  ;;  %5496 = vmatpush3.msra.mxu0 %v1764_v27  ;;  %v3084_v27 = vld [vmem:[%s6934_s12 + $0x10] sm:$0xff] }
 0x30f   : > { %v2125_v26 = vmul.f32 %v5793_v25, %v5785_v8  ;;  %5505 = vmatprep.subr.mxu0 %v5878_v2  ;;  %v3085_v25 = vld [vmem:[%s6934_s12 + $0x18] sm:$0xff] }
 0x311   : > { %5493 = vmatmul.mubr.msk.f32.vlgmr.msra.gmra.mxu1 %vm1769_vm2, %v2125_v26  ;;  %v3089_v26 = vld [vmem:[%s6934_s12 + $0x38] sm:$0xff] }
 0x312   : > { %5502 = vmatprep.mubr.msk.f32.mxu1 %vm5879_vm1, %v5878_v2  ;;  %5501 = vmatpush3.msra.mxu1 %v1765_v28  ;;  %v3088_v28 = vld [vmem:[%s6934_s12 + $0x30] sm:$0xff] }
 0x313   : > { %5510 = vmatprep.subr.mxu1 %v5878_v2 }
 0x3c2   : > { %v2195_v30 = vpop.f32.mrf.mxu0 }
 0x3c3   : > { %5498 = vmatmul.mubr.msk.f32.vlgmr.msra.gmra.mxu0 %vm1769_vm2, %v2195_v30  ;;  %v3087_v30 = vld [vmem:[%s6934_s12 + $0x28] sm:$0xff] }
 0x3c4   : > { %v5479_v31 = vpop.f32.mrf.mxu0  ;;  %5506 = vmatpush3.msra.mxu0 %v1766_v29  ;;  %5507 = vmatprep.mubr.msk.f32.mxu0 %vm5879_vm1, %v5878_v2  ;;  %v3083_v29 = vld [vmem:[%s6934_s12 + $0x8] sm:$0xff] }
 0x3c5   : > { %5515 = vmatprep.subr.mxu0 %v5878_v2  ;;  %v3082_v31 = vld [vmem:[%s6934_s12] sm:$0xff] }
 0x3c6   : > { %v2268_v33 = vpop.f32.mrf.mxu1 }
 0x3c7   : > { %5503 = vmatmul.mubr.msk.f32.vlgmr.msra.gmra.mxu1 %vm1769_vm2, %v2268_v33  ;;  %v6556_v33 = vld [vmem:[%s775_s27] sm:$0xff]  ;;  %s5880_s27 = smov [#allocation2]  }
 0x3c8   : > { %v5484_v34 = vpop.f32.mrf.mxu1  ;;  %5511 = vmatpush3.msra.mxu1 %v1767_v32  ;;  %5512 = vmatprep.mubr.msk.f32.mxu1 %vm5879_vm1, %v5878_v2  ;;  %v3086_v32 = vld [vmem:[%s6934_s12 + $0x20] sm:$0xff]  ;;  %s5820_s5 = sshll.u32 %s5880_s27, 4  ;;  %s5821_s5 = int_to_ptr.vmem [resolvable:$false] %s5820_s5 }
 0x3c9   : > { %5526 = vmatprep.subr.mxu1 %v5878_v2  ;;  %v3093_v34 = vld [vmem:[%s6934_s12 + $0x58] sm:$0xff]  ;;  %s5822_s6 = scalar_lea.vmem %s5821_s5, 256 }
 0x3cd   : > { %v2341_v35 = vpop.f32.mrf.mxu0 }
 0x3ce   : > { %5508 = vmatmul.mubr.msk.f32.vlgmr.msra.gmra.mxu0 %vm1769_vm2, %v2341_v35  ;;  %v3097_v35 = vld [vmem:[%s6934_s12 + $0x78] sm:$0xff] }
 0x3cf   : > { %v5489_v36 = vpop.f32.mrf.mxu0  ;;  %5523 = vmatprep.mubr.msk.f32.mxu0 %vm5879_vm1, %v5878_v2  ;;  %5516 = vmatpush3.msra.mxu0 %v2758_v63 }
 0x3d0   : > { %5517 = vmatprep.subr.mxu0 %v5878_v2  ;;  %v3092_v36 = vld [vmem:[%s6934_s12 + $0x50] sm:$0xff] }
 0x3d1   : > { %v2414_v37 = vpop.f32.mrf.mxu1 }
 0x3d2   : > { %5513 = vmatmul.mubr.msk.f32.vlgmr.msra.gmra.mxu1 %vm1769_vm2, %v2414_v37  ;;  %v3096_v37 = vld [vmem:[%s6934_s12 + $0x70] sm:$0xff] }
 0x3d3   : > { %v5494_v38 = vpop.f32.mrf.mxu1  ;;  %5534 = vmatprep.mubr.msk.f32.mxu1 %vm5879_vm1, %v5878_v2  ;;  %5527 = vmatpush3.msra.mxu1 %v2762_v0 }
 0x3d4   : > { %5528 = vmatprep.subr.mxu1 %v5878_v2  ;;  %v3091_v38 = vld [vmem:[%s6934_s12 + $0x48] sm:$0xff] }
 0x3d5   : > { %5529 = vmatpush3.msra.mxu1 %v2761_v1  ;;  %v5096_v1 = vld [vmem:[%s6935_s13] ss:$0 sm:$0xff] }
 0x3d6   : > { %5530 = vmatprep.subr.mxu1 %v5878_v2 }
 0x3d7   : > { %5531 = vmatpush3.msra.mxu1 %v2760_v4 }
 0x3d8   : > { %5532 = vmatprep.subr.mxu1 %v5878_v2 }
 0x3d9   : > { %5533 = vmatpush3.msra.mxu1 %v2759_v6  ;;  %v5088_v6 = vld [vmem:[%s6987_s11] ss:$0 sm:$0xff] }
 0x3da   : > { %5548 = vmatprep.subr.mxu1 %v5878_v2 }
 0x483   : > { %v2487_v39 = vpop.f32.mrf.mxu0 }
 0x484   : > { %v2710_v45 = vsel %vm920_vm0, %v2487_v39, 0.0  ;;  %v3095_v39 = vld [vmem:[%s6934_s12 + $0x68] sm:$0xff] }
 0x485   : > { %v5499_v40 = vpop.f32.mrf.mxu0 }
 0x486   : > { %v3090_v40 = vld [vmem:[%s6934_s12 + $0x40] sm:$0xff] }
 0x487   : > { %v2560_v41 = vpop.f32.mrf.mxu1 }
 0x488   : > { %v2711_v43 = vsel %vm920_vm0, %v2560_v41, 0.0  ;;  %v3094_v41 = vld [vmem:[%s6934_s12 + $0x60] sm:$0xff] }
 0x489   : > { %v5504_v42 = vpop.f32.mrf.mxu1  ;;  %v2712_v47 = vadd.f32 %v2711_v43, %v2710_v45  ;;  %v3105_v43 = vld [vmem:[%s6934_s12 + $0xb8] sm:$0xff]  ;;  %v3104_v45 = vld [vmem:[%s6934_s12 + $0xb0] sm:$0xff] }
 0x48a   : > { %v3101_v42 = vld [vmem:[%s6934_s12 + $0x98] sm:$0xff] }
 0x48e   : > { %v2633_v44 = vpop.f32.mrf.mxu0 }
 0x48f   : > { %v2713_v46 = vsel %vm920_vm0, %v2633_v44, 0.0  ;;  %v3100_v44 = vld [vmem:[%s6934_s12 + $0x90] sm:$0xff] }
 0x490   : > { %v5509_v48 = vpop.f32.mrf.mxu0  ;;  %v2714_v49 = vadd.f32 %v2713_v46, %v2712_v47  ;;  %v3099_v46 = vld [vmem:[%s6934_s12 + $0x88] sm:$0xff] }
 0x491   : > { %v3103_v47 = vld [vmem:[%s6934_s12 + $0xa8] sm:$0xff]  ;;  %v3098_v48 = vld [vmem:[%s6934_s12 + $0x80] sm:$0xff] }
 0x492   : > { %v2706_v50 = vpop.f32.mrf.mxu1 }
 0x493   : > { %v2715_v52 = vsel %vm920_vm0, %v2706_v50, 0.0  ;;  %v3109_v50 = vld [vmem:[%s6934_s12 + $0xd8] sm:$0xff] }
 0x494   : > { %v2716_v53 = vadd.f32 %v2715_v52, %v2714_v49  ;;  %v5514_v54 = vpop.f32.mrf.mxu1  ;;  %v3102_v49 = vld [vmem:[%s6934_s12 + $0xa0] sm:$0xff]  ;;  %v3108_v52 = vld [vmem:[%s6934_s12 + $0xd0] sm:$0xff] }
 0x495   : > { %v3107_v54 = vld [vmem:[%s6934_s12 + $0xc8] sm:$0xff] }
 0x496   : > { %v2723_v55 = vadd.f32 %v5085_v51, %v2716_v53  ;;  %v3113_v51 = vld [vmem:[%s6934_s12 + $0xf8] sm:$0xff]  ;;  %v3112_v53 = vld [vmem:[%s6934_s12 + $0xf0] sm:$0xff] }
 0x498   : > { %v2724_v56 = vadd.f32 %v2723_v55, %v6092_v9  ;;  %v2757_v9 = vld [vmem:[%s6983_s10 + $0x10] sm:$0xff]  ;;  %v3111_v55 = vld [vmem:[%s6934_s12 + $0xe8] sm:$0xff]  ;;  %s4939_s10 = scalar_lea.hbm %s6946_s24, %s5138_s4 }
 0x499   : > { %5518 = vmatpush3.msra.mxu0 %v2757_v9 }
 0x49a   : > { %v2727_v57 = vsel %vm920_vm0, %v2724_v56, 0.0  ;;  %5519 = vmatprep.subr.mxu0 %v5878_v2 }
 0x49b   : > { %2728 = vadd.xlane.f32.xlu0 %v2727_v57  ;;  %5520 = vmatpush3.msra.mxu0 %v2756_v3  ;;  %v3110_v57 = vld [vmem:[%s6934_s12 + $0xe0] sm:$0xff] }
 0x49c   : > { %5521 = vmatprep.subr.mxu0 %v5878_v2  ;;  %v5097_v3 = vld [vmem:[%s6935_s13 + $0x1] ss:$0 sm:$0xff] }
 0x49d   : > { %5522 = vmatpush3.msra.mxu0 %v2755_v5 }
 0x49e   : > { %5537 = vmatprep.subr.mxu0 %v5878_v2 }
 0x524   : > { %v2729_v58 = vpop.xlane.xlu0 %2728 }
 0x525   : > { %v2731_v59 = vmul.f32 0.03125, %v2729_v58 }
 0x527   : > { %v2732_v60 = vsub.f32 %v2724_v56, %v2731_v59  ;;  %v3106_v56 = vld [vmem:[%s6934_s12 + $0xc0] sm:$0xff] }
 0x529   : > { %v2733_v61 = vmul.f32 %v2732_v60, %v2732_v60 }
 0x52b   : > { %v2734_v62 = vsel %vm920_vm0, %v2733_v61, 0.0 }
 0x52c   : > { %2735 = vadd.xlane.f32.xlu1 %v2734_v62 }
 0x5b5   : > { %v2736_v7 = vpop.xlane.xlu1 %2735 }
 0x5b6   : > { %v2737_v8 = vmul.f32 0.03125, %v2736_v7  ;;  %v5089_v7 = vld [vmem:[%s6987_s11 + $0x1] ss:$0 sm:$0xff] }
 0x5b8   : > { %v2738_v10 = vadd.f32 1e-05, %v2737_v8 }
 0x5ba   : > { %5794 = vrsqrt.f32 %v2738_v10 }
 0x5c7   : > { %v5795_v11 = vpop.eup %5794 }
 0x5c8   : > { %v2740_v13 = vmul.f32 %v5795_v11, %v2732_v60 }
 0x5ca   : > { %v2747_v15 = vmul.f32 %v5086_v12, %v2740_v13 }
 0x5cc   : > { %v6476_v16 = vadd.f32 %v5087_v14, %v2747_v15  ;;  %v5098_v15 = vld [vmem:[%s6935_s13 + $0x2] ss:$0 sm:$0xff] }
 0x5ce   : > { %5524 = vmatmul.mubr.msk.f32.vlgmr.msra.gmra.mxu0 %vm920_vm0, %v6476_v16  ;;  %5535 = vmatmul.mubr.msk.f32.vlgmr.msra.gmra.mxu1 %vm920_vm0, %v6476_v16 }
 0x5cf   : > { %5538 = vmatpush3.msra.mxu0 %v2766_v17  ;;  %5549 = vmatpush3.msra.mxu1 %v2770_v18  ;;  %v5099_v17 = vld [vmem:[%s6935_s13 + $0x3] ss:$0 sm:$0xff] }
 0x5d0   : > { %5539 = vmatprep.subr.mxu0 %v5878_v2  ;;  %5550 = vmatprep.subr.mxu1 %v5878_v2 }
 0x5d1   : > { %5540 = vmatpush3.msra.mxu0 %v2765_v19  ;;  %5551 = vmatpush3.msra.mxu1 %v2769_v20  ;;  %v5090_v20 = vld [vmem:[%s6987_s11 + $0x2] ss:$0 sm:$0xff] }
 0x5d2   : > { %5541 = vmatprep.subr.mxu0 %v5878_v2  ;;  %5552 = vmatprep.subr.mxu1 %v5878_v2 }
 0x5d3   : > { %5542 = vmatpush3.msra.mxu0 %v2764_v21  ;;  %5553 = vmatpush3.msra.mxu1 %v2768_v22  ;;  %v5091_v21 = vld [vmem:[%s6987_s11 + $0x3] ss:$0 sm:$0xff]  ;;  %s4928_s11 = scalar_lea.sflag [#allocation3], %s765_s0 }
 0x5d4   : > { %5543 = vmatprep.subr.mxu0 %v5878_v2  ;;  %5554 = vmatprep.subr.mxu1 %v5878_v2 }
 0x5d5   : > { %5544 = vmatpush3.msra.mxu0 %v2763_v23  ;;  %5545 = vmatprep.mubr.msk.f32.mxu0 %vm5879_vm1, %v5878_v2 }
 0x5d6   : > { %5555 = vmatpush3.msra.mxu1 %v2767_v24  ;;  %5556 = vmatprep.mubr.msk.f32.mxu1 %vm5879_vm1, %v5878_v2 }
 0x5d7   : > { %5546 = vmatmul.mubr.msk.f32.vlgmr.msra.gmra.mxu0 %vm920_vm0, %v6476_v16  ;;  %5557 = vmatmul.mubr.msk.f32.vlgmr.msra.gmra.mxu1 %vm920_vm0, %v6476_v16 }
 0x5d8   : > { %5559 = vmatprep.subr.mxu0 %v5878_v2  ;;  %5570 = vmatprep.subr.mxu1 %v5878_v2 }
 0x5d9   : > { %5560 = vmatpush3.msra.mxu0 %v3085_v25  ;;  %5571 = vmatpush3.msra.mxu1 %v3089_v26 }
 0x5da   : > { %5561 = vmatprep.subr.mxu0 %v5878_v2  ;;  %5572 = vmatprep.subr.mxu1 %v5878_v2 }
 0x5db   : > { %5562 = vmatpush3.msra.mxu0 %v3084_v27  ;;  %5573 = vmatpush3.msra.mxu1 %v3088_v28  ;;  %v5100_v28 = vld [vmem:[%s6935_s13 + $0x4] ss:$0 sm:$0xff] }
 0x5dc   : > { %5563 = vmatprep.subr.mxu0 %v5878_v2  ;;  %5574 = vmatprep.subr.mxu1 %v5878_v2 }
 0x5dd   : > { %5564 = vmatpush3.msra.mxu0 %v3083_v29  ;;  %5575 = vmatpush3.msra.mxu1 %v3087_v30  ;;  %v5101_v29 = vld [vmem:[%s6935_s13 + $0x5] ss:$0 sm:$0xff] }
 0x5de   : > { %5565 = vmatprep.subr.mxu0 %v5878_v2  ;;  %5576 = vmatprep.subr.mxu1 %v5878_v2 }
 0x5df   : > { %5566 = vmatpush3.msra.mxu0 %v3082_v31  ;;  %5567 = vmatprep.mubr.msk.f32.mxu0 %vm5879_vm1, %v5878_v2 }
 0x5e0   : > { %5577 = vmatpush3.msra.mxu1 %v3086_v32  ;;  %5578 = vmatprep.mubr.msk.f32.mxu1 %vm5879_vm1, %v5878_v2 }
 0x5e1   : > { %5568 = vmatmul.mubr.msk.f32.vlgmr.msra.gmra.mxu0 %vm920_vm0, %v6556_v33  ;;  %5579 = vmatmul.mubr.msk.f32.vlgmr.msra.gmra.mxu1 %vm920_vm0, %v6556_v33 }
 0x5e2   : > { %5581 = vmatprep.subr.mxu0 %v5878_v2  ;;  %5592 = vmatprep.subr.mxu1 %v5878_v2 }
 0x5e3   : > { %5582 = vmatpush3.msra.mxu0 %v3093_v34  ;;  %5593 = vmatpush3.msra.mxu1 %v3097_v35 }
 0x5e4   : > { %5583 = vmatprep.subr.mxu0 %v5878_v2  ;;  %5594 = vmatprep.subr.mxu1 %v5878_v2 }
 0x5e5   : > { %5584 = vmatpush3.msra.mxu0 %v3092_v36  ;;  %5595 = vmatpush3.msra.mxu1 %v3096_v37 }
 0x5e6   : > { %5585 = vmatprep.subr.mxu0 %v5878_v2  ;;  %5596 = vmatprep.subr.mxu1 %v5878_v2 }
 0x5e7   : > { %5586 = vmatpush3.msra.mxu0 %v3091_v38  ;;  %5597 = vmatpush3.msra.mxu1 %v3095_v39 }
 0x5e8   : > { %5587 = vmatprep.subr.mxu0 %v5878_v2  ;;  %5598 = vmatprep.subr.mxu1 %v5878_v2 }
 0x5e9   : > { %5588 = vmatpush3.msra.mxu0 %v3090_v40  ;;  %5589 = vmatprep.mubr.msk.f32.mxu0 %vm5879_vm1, %v5878_v2 }
 0x5ea   : > { %5599 = vmatpush3.msra.mxu1 %v3094_v41  ;;  %5600 = vmatprep.mubr.msk.f32.mxu1 %vm5879_vm1, %v5878_v2 }
 0x5eb   : > { %5590 = vmatmul.mubr.msk.f32.vlgmr.msra.gmra.mxu0 %vm920_vm0, %v6556_v33  ;;  %5601 = vmatmul.mubr.msk.f32.vlgmr.msra.gmra.mxu1 %vm920_vm0, %v6556_v33 }
 0x5ec   : > { %5603 = vmatprep.subr.mxu0 %v5878_v2  ;;  %5614 = vmatprep.subr.mxu1 %v5878_v2 }
 0x5ed   : > { %5611 = vmatprep.mubr.msk.f32.mxu0 %vm5879_vm1, %v5878_v2  ;;  %5622 = vmatprep.mubr.msk.f32.mxu1 %vm5879_vm1, %v5878_v2 }
 0x5ee   : > { %5604 = vmatpush3.msra.mxu0 %v3101_v42  ;;  %5615 = vmatpush3.msra.mxu1 %v3105_v43  ;;  %v787_v42 = vld [vmem:[%s783_s25] sm:$0xff]  ;;  %s4941_s25 = sshll.u32 %s767_s9, 4  ;;  %s4942_s25 = int_to_ptr.vmem [resolvable:$true] %s4941_s25 }
 0x5ef   : > { %5605 = vmatprep.subr.mxu0 %v5878_v2  ;;  %5616 = vmatprep.subr.mxu1 %v5878_v2  ;;  %s5816_s8 = scalar_lea.vmem %s4942_s25, 128  ;;  %p5823_p0 = scmp.lt.s32.totalorder %s4942_s25, %s5821_s5 }
 0x5f0   : > { %5606 = vmatpush3.msra.mxu0 %v3100_v44  ;;  %5617 = vmatpush3.msra.mxu1 %v3104_v45  ;;  %p5817_p11 = scmp.ne.s32.totalorder %s4942_s25, %s5816_s8  ;;  %p5824_p1 = scmp.lt.s32.totalorder %s5822_s6, %s5816_s8 }
 0x5f1   : > { %5607 = vmatprep.subr.mxu0 %v5878_v2  ;;  %5618 = vmatprep.subr.mxu1 %v5878_v2 }
 0x5f2   : > { %5608 = vmatpush3.msra.mxu0 %v3099_v46  ;;  %5619 = vmatpush3.msra.mxu1 %v3103_v47  ;;  %p5818_p12 = pnand %p5817_p11, %p6044_p5  ;;  %p5825_p2 = por %p5824_p1, %p5823_p0 }
 0x5f3   : > { %5609 = vmatprep.subr.mxu0 %v5878_v2  ;;  %5620 = vmatprep.subr.mxu1 %v5878_v2 }
 0x5f4   : > { %5610 = vmatpush3.msra.mxu0 %v3098_v48  ;;  %5621 = vmatpush3.msra.mxu1 %v3102_v49  ;;  %p5819_p13 = pneg %p5818_p12 }
 0x5f5   : > { %5625 = vmatprep.subr.mxu0 %v5878_v2  ;;  %5636 = vmatprep.subr.mxu1 %v5878_v2 }
 0x5f6   : > { %5612 = vmatmul.mubr.msk.f32.vlgmr.msra.gmra.mxu0 %vm920_vm0, %v6556_v33  ;;  %5623 = vmatmul.mubr.msk.f32.vlgmr.msra.gmra.mxu1 %vm920_vm0, %v6556_v33  ;;  %p5826_p3 = pnand %p5825_p2, %p5819_p13 }
 0x5f7   : > { %5626 = vmatpush3.msra.mxu0 %v3109_v50  ;;  %5637 = vmatpush3.msra.mxu1 %v3113_v51 }
 0x5f8   : > { %5627 = vmatprep.subr.mxu0 %v5878_v2  ;;  %5638 = vmatprep.subr.mxu1 %v5878_v2 }
 0x5f9   : > { %5628 = vmatpush3.msra.mxu0 %v3108_v52  ;;  %5639 = vmatpush3.msra.mxu1 %v3112_v53 }
 0x5fa   : > { %5629 = vmatprep.subr.mxu0 %v5878_v2  ;;  %5640 = vmatprep.subr.mxu1 %v5878_v2 }
 0x5fb   : > { %5630 = vmatpush3.msra.mxu0 %v3107_v54  ;;  %5641 = vmatpush3.msra.mxu1 %v3111_v55 }
 0x5fc   : > { %5631 = vmatprep.subr.mxu0 %v5878_v2  ;;  %5642 = vmatprep.subr.mxu1 %v5878_v2 }
 0x5fd   : > { %5633 = vmatprep.mubr.msk.f32.mxu0 %vm5879_vm1, %v5878_v2  ;;  %5644 = vmatprep.mubr.msk.f32.mxu1 %vm5879_vm1, %v5878_v2 }
 0x5fe   : > { %5632 = vmatpush3.msra.mxu0 %v3106_v56  ;;  %5643 = vmatpush3.msra.mxu1 %v3110_v57 }
 0x5ff   : > { %5634 = vmatmul.mubr.msk.f32.vlgmr.msra.gmra.mxu0 %vm920_vm0, %v6556_v33  ;;  %5645 = vmatmul.mubr.msk.f32.vlgmr.msra.gmra.mxu1 %vm920_vm0, %v6556_v33 }
 0x600   : > { %5647 = vmatprep.subr.mxu0 %v5878_v2  ;;  %5652 = vmatprep.subr.mxu1 %v5878_v2 }
 0x601   : > { %5649 = vmatprep.mubr.msk.f32.mxu0 %vm5879_vm1, %v5878_v2  ;;  %5654 = vmatprep.mubr.msk.f32.mxu1 %vm5879_vm1, %v5878_v2 }
 0x68e   : > { %v2868_v58 = vpop.f32.mrf.mxu0  ;;  %v2938_v59 = vpop.f32.mrf.mxu1 }
 0x68f   : > { %v2869_v13 = vadd.f32 %v5088_v6, %v2868_v58  ;;  %v2939_v14 = vadd.f32 %v5089_v7, %v2938_v59 }
 0x690   : > { %v5525_v60 = vpop.f32.mrf.mxu0  ;;  %v5536_v61 = vpop.f32.mrf.mxu1 }
 0x697   : > { %v3008_v62 = vpop.f32.mrf.mxu0  ;;  %v3078_v63 = vpop.f32.mrf.mxu1 }
 0x698   : > { %v3009_v26 = vadd.f32 %v5090_v20, %v3008_v62  ;;  %v3079_v27 = vadd.f32 %v5091_v21, %v3078_v63 }
 0x699   : > { %v5547_v0 = vpop.f32.mrf.mxu0  ;;  %v5558_v9 = vpop.f32.mrf.mxu1 }
 0x6a1   : > { %v3239_v4 = vpop.f32.mrf.mxu0  ;;  %v3309_v5 = vpop.f32.mrf.mxu1 }
 0x6a2   : > { %v3240_v8 = vadd.f32 %v5096_v1, %v3239_v4  ;;  %v3310_v10 = vadd.f32 %v5097_v3, %v3309_v5 }
 0x6a3   : > { %v5569_v11 = vpop.f32.mrf.mxu0  ;;  %v5580_v12 = vpop.f32.mrf.mxu1 }
 0x6a4   : > { %5648 = vmatpush3.xpose.msk.msra.mxu0 %vm1769_vm2, %v3240_v8  ;;  %5653 = vmatpush3.xpose.msk.msra.mxu1 %vm1769_vm2, %v3310_v10 }
 0x6a5   : > { %5657 = vmatprep.subr.mxu0 %v5878_v2  ;;  %5662 = vmatprep.subr.mxu1 %v5878_v2 }
 0x6a7   : > { %5650 = vmatmul.mubr.msk.f32.vlgmr.msra.gmra.mxu0 %vm1769_vm2, %v2869_v13  ;;  %5655 = vmatmul.mubr.msk.f32.vlgmr.msra.gmra.mxu1 %vm1769_vm2, %v2939_v14 }
 0x6a8   : > { %5659 = vmatprep.mubr.msk.f32.mxu0 %vm5879_vm1, %v5878_v2  ;;  %5664 = vmatprep.mubr.msk.f32.mxu1 %vm5879_vm1, %v5878_v2 }
 0x6ab   : > { %v3379_v18 = vpop.f32.mrf.mxu0  ;;  %v3449_v19 = vpop.f32.mrf.mxu1 }
 0x6ac   : > { %v3380_v22 = vadd.f32 %v5098_v15, %v3379_v18  ;;  %v3450_v23 = vadd.f32 %v5099_v17, %v3449_v19 }
 0x6ad   : > { %v5591_v24 = vpop.f32.mrf.mxu0  ;;  %v5602_v25 = vpop.f32.mrf.mxu1 }
 0x6ae   : > { %5658 = vmatpush3.xpose.msk.msra.mxu0 %vm1769_vm2, %v3380_v22  ;;  %5663 = vmatpush3.xpose.msk.msra.mxu1 %vm1769_vm2, %v3450_v23  ;;  %v5103_v23 = vld [vmem:[%s6935_s13 + $0x7] ss:$0 sm:$0xff]  ;;  %v5102_v25 = vld [vmem:[%s6935_s13 + $0x6] ss:$0 sm:$0xff] }
 0x6af   : > { %5667 = vmatprep.subr.mxu0 %v5878_v2  ;;  %5672 = vmatprep.subr.mxu1 %v5878_v2 }
 0x6b1   : > { %5660 = vmatmul.mubr.msk.f32.vlgmr.msra.gmra.mxu0 %vm1769_vm2, %v3009_v26  ;;  %5665 = vmatmul.mubr.msk.f32.vlgmr.msra.gmra.mxu1 %vm1769_vm2, %v3079_v27 }
 0x6b2   : > { %5669 = vmatprep.mubr.msk.f32.mxu0 %vm5879_vm1, %v5878_v2  ;;  %5674 = vmatprep.mubr.msk.f32.mxu1 %vm5879_vm1, %v5878_v2 }
 0x6b6   : > { %v3519_v30 = vpop.f32.mrf.mxu0  ;;  %v3589_v31 = vpop.f32.mrf.mxu1 }
 0x6b7   : > { %v3520_v32 = vadd.f32 %v5100_v28, %v3519_v30  ;;  %v3590_v33 = vadd.f32 %v5101_v29, %v3589_v31 }
 0x6b8   : > { %v5613_v34 = vpop.f32.mrf.mxu0  ;;  %v5624_v35 = vpop.f32.mrf.mxu1 }
 0x6b9   : > { %5668 = vmatpush3.msra.mxu0 %v3520_v32  ;;  %5673 = vmatpush3.msra.mxu1 %v3590_v33  ;;  %v3733_v35 = vld [vmem:[%s6936_s14] sm:$0xff] }
 0x6ba   : > { %5677 = vmatprep.subr.mxu0 %v5878_v2  ;;  %5682 = vmatprep.subr.mxu1 %v5878_v2 }
 0x6bf   : > { %v6744_v36 = vpop.f32.mrf.mxu0  ;;  %v6746_v37 = vpop.f32.mrf.mxu1 }
 0x6c0   : > { %v3730_v28 = vadd.f32 %v5103_v23, %v6746_v37  ;;  %v3660_v30 = vadd.f32 %v5102_v25, %v6744_v36  ;;  %v3734_v36 = vld [vmem:[%s6936_s14 + $0x8] sm:$0xff]  ;;  %v3736_v37 = vld [vmem:[%s6936_s14 + $0x18] sm:$0xff]  ;;  %v5130_v23 = vld [vmem:[%s6939_s17] ss:$0 sm:$0xff] }
 0x6c1   : > { %v5635_v38 = vpop.f32.mrf.mxu0  ;;  %v5646_v39 = vpop.f32.mrf.mxu1 }
 0x6c2   : > { %v3735_v39 = vld [vmem:[%s6936_s14 + $0x10] sm:$0xff] }
 0x767   : > { %v3810_v40 = vpop.f32.mrf.mxu0  ;;  %v3886_v41 = vpop.f32.mrf.mxu1 }
 0x768   : > { %v4042_v43 = vmul.f32 0.35355338, %v3810_v40  ;;  %v4043_v44 = vmul.f32 0.35355338, %v3886_v41 }
 0x769   : > { %v5651_v45 = vpop.f32.mrf.mxu0  ;;  %v5656_v46 = vpop.f32.mrf.mxu1 }
 0x76a   : > { %v4047_v47 = vadd.f32 %v4043_v44, %v787_v42  ;;  %v4046_v48 = vadd.f32 %v4042_v43, %v787_v42 }
 0x76c   : > { %v4053_v49 = vsel %vm1769_vm2, %v4047_v47, -inf  ;;  %v4050_v50 = vsel %vm1769_vm2, %v4046_v48, -inf }
 0x76d   : > { %4054 = vmax.xlane.f32.xlu1 %v4053_v49  ;;  %4051 = vmax.xlane.f32.xlu0 %v4050_v50 }
 0x771   : > { %v3962_v51 = vpop.f32.mrf.mxu0  ;;  %v4038_v52 = vpop.f32.mrf.mxu1 }
 0x772   : > { %v4044_v53 = vmul.f32 0.35355338, %v3962_v51  ;;  %v4045_v54 = vmul.f32 0.35355338, %v4038_v52 }
 0x773   : > { %v5661_v55 = vpop.f32.mrf.mxu0  ;;  %v5666_v56 = vpop.f32.mrf.mxu1 }
 0x774   : > { %v4049_v57 = vadd.f32 %v4045_v54, %v787_v42  ;;  %v4048_v58 = vadd.f32 %v4044_v53, %v787_v42 }
 0x776   : > { %v4059_v59 = vsel %vm1769_vm2, %v4049_v57, -inf  ;;  %v4056_v60 = vsel %vm1769_vm2, %v4048_v58, -inf }
 0x777   : > { %4060 = vmax.xlane.f32.xlu1 %v4059_v59  ;;  %4057 = vmax.xlane.f32.xlu0 %v4056_v60  ;;  %v5128_v60 = vld [vmem:[%s6937_s15] ss:$0 sm:$0xff] }
 0x7f6   : > { %v4055_v61 = vpop.xlane.xlu1 %4054  ;;  %v4052_v62 = vpop.xlane.xlu0 %4051 }
 0x7f7   : > { %v4063_v63 = vsub.f32 %v4047_v47, %v4055_v61  ;;  %v4062_v0 = vsub.f32 %v4046_v48, %v4052_v62 }
 0x7f9   : > { %v4068_v9 = vmul.f32 1.442695, %v4063_v63  ;;  %v4066_v1 = vmul.f32 1.442695, %v4062_v0 }
 0x7fb   : > { %5796 = vpow2.f32 %v4068_v9 }
 0x7fc   : > { %5798 = vpow2.f32 %v4066_v1 }
 0x800   : > { %v4061_v3 = vpop.xlane.xlu1 %4060  ;;  %v4058_v4 = vpop.xlane.xlu0 %4057 }
 0x801   : > { %v4065_v5 = vsub.f32 %v4049_v57, %v4061_v3  ;;  %v4064_v6 = vsub.f32 %v4048_v58, %v4058_v4 }
 0x803   : > { %v4072_v7 = vmul.f32 1.442695, %v4065_v5  ;;  %v4070_v8 = vmul.f32 1.442695, %v4064_v6 }
 0x805   : > { %5800 = vpow2.f32 %v4072_v7  ;;  %v4725_v7 = vld [vmem:[%s6940_s18 + $0x18] sm:$0xff] }
 0x806   : > { %5802 = vpow2.f32 %v4070_v8  ;;  %v4723_v8 = vld [vmem:[%s6940_s18 + $0x8] sm:$0xff] }
 0x808   : > { %v5797_v10 = vpop.eup %5796 }
 0x809   : > { %v5799_v11 = vpop.eup %5798  ;;  %v4077_v12 = vsel %vm1769_vm2, %v5797_v10, 0.0 }
 0x80a   : > { %4078 = vadd.xlane.f32.xlu1 %v4077_v12  ;;  %v4074_v13 = vsel %vm1769_vm2, %v5799_v11, 0.0  ;;  %v4813_v12 = vld [vmem:[%s6942_s20 + $0x30] sm:$0xff] }
 0x80b   : > { %4075 = vadd.xlane.f32.xlu0 %v4074_v13  ;;  %v4812_v13 = vld [vmem:[%s6942_s20 + $0x28] sm:$0xff] }
 0x812   : > { %v5801_v14 = vpop.eup %5800 }
 0x813   : > { %v5803_v15 = vpop.eup %5802  ;;  %v4083_v17 = vsel %vm1769_vm2, %v5801_v14, 0.0 }
 0x814   : > { %4084 = vadd.xlane.f32.xlu1 %v4083_v17  ;;  %v4080_v18 = vsel %vm1769_vm2, %v5803_v15, 0.0 }
 0x815   : > { %4081 = vadd.xlane.f32.xlu0 %v4080_v18 }
 0x893   : > { %v4079_v19 = vpop.xlane.xlu1 %4078 }
 0x894   : > { %5804 = vrcp.f32 %v4079_v19  ;;  %v4076_v20 = vpop.xlane.xlu0 %4075 }
 0x895   : > { %5806 = vrcp.f32 %v4076_v20 }
 0x89d   : > { %v4085_v21 = vpop.xlane.xlu1 %4084 }
 0x89e   : > { %5808 = vrcp.f32 %v4085_v21  ;;  %v4082_v22 = vpop.xlane.xlu0 %4081  ;;  %v5129_v21 = vld [vmem:[%s6938_s16] ss:$0 sm:$0xff] }
 0x89f   : > { %5810 = vrcp.f32 %v4082_v22 }
 0x8a1   : > { %v5805_v24 = vpop.eup %5804 }
 0x8a2   : > { %v5807_v26 = vpop.eup %5806  ;;  %v4091_v27 = vmul.f32 %v5805_v24, %v5797_v10  ;;  %v4722_v10 = vld [vmem:[%s6940_s18] sm:$0xff] }
 0x8a3   : > { %v4090_v29 = vmul.f32 %v5807_v26, %v5799_v11  ;;  %v4814_v11 = vld [vmem:[%s6942_s20 + $0x38] sm:$0xff]  ;;  %v4809_v26 = vld [vmem:[%s6942_s20 + $0x10] sm:$0xff] }
 0x8a4   : > { %5675 = vmatmul.mubr.msk.f32.vlgmr.msra.gmra.mxu1 %vm1769_vm2, %v4091_v27  ;;  %v4808_v27 = vld [vmem:[%s6942_s20 + $0x8] sm:$0xff] }
 0x8a5   : > { %5670 = vmatmul.mubr.msk.f32.vlgmr.msra.gmra.mxu0 %vm1769_vm2, %v4090_v29  ;;  %5683 = vmatpush3.msra.mxu1 %v3730_v28  ;;  %v4807_v28 = vld [vmem:[%s6942_s20] sm:$0xff] }
 0x8a6   : > { %5678 = vmatpush3.msra.mxu0 %v3660_v30  ;;  %5679 = vmatprep.mubr.msk.f32.mxu0 %vm5879_vm1, %v5878_v2  ;;  %v5131_v29 = vld [vmem:[%s6941_s19] ss:$0 sm:$0xff] }
 0x8a7   : > { %5684 = vmatprep.mubr.msk.f32.mxu1 %vm5879_vm1, %v5878_v2  ;;  %5687 = vmatprep.subr.mxu0 %v5878_v2 }
 0x8a8   : > { %5692 = vmatprep.subr.mxu1 %v5878_v2 }
 0x8ab   : > { %v5809_v31 = vpop.eup %5808 }
 0x8ac   : > { %v5811_v32 = vpop.eup %5810  ;;  %v4093_v33 = vmul.f32 %v5809_v31, %v5801_v14  ;;  %v4811_v14 = vld [vmem:[%s6942_s20 + $0x20] sm:$0xff] }
 0x8ad   : > { %v4092_v34 = vmul.f32 %v5811_v32, %v5803_v15  ;;  %v4810_v15 = vld [vmem:[%s6942_s20 + $0x18] sm:$0xff] }
 0x8ae   : > { %5685 = vmatmul.mubr.msk.f32.vlgmr.msra.gmra.mxu1 %vm1769_vm2, %v4093_v33 }
 0x8af   : > { %5680 = vmatmul.mubr.msk.f32.vlgmr.msra.gmra.mxu0 %vm1769_vm2, %v4092_v34  ;;  %5694 = vmatprep.mubr.msk.f32.mxu1 %vm5879_vm1, %v5878_v2  ;;  %v5133_v34 = vld [vmem:[%s6943_s21] ss:$0 sm:$0xff] }
 0x8b0   : > { %5689 = vmatprep.mubr.msk.f32.mxu0 %vm5879_vm1, %v5878_v2  ;;  %5688 = vmatpush3.msra.mxu0 %v3733_v35 }
 0x8b1   : > { %5693 = vmatpush3.msra.mxu1 %v3734_v36  ;;  %5697 = vmatprep.subr.mxu0 %v5878_v2 }
 0x8b2   : > { %5702 = vmatprep.subr.mxu1 %v5878_v2 }
 0x964   : > { %v4236_v38 = vpop.f32.mrf.mxu1 }
 0x965   : > { %v4163_v40 = vpop.f32.mrf.mxu0  ;;  %5695 = vmatmul.mubr.msk.f32.vlgmr.msra.gmra.mxu1 %vm1769_vm2, %v4236_v38 }
 0x966   : > { %5690 = vmatmul.mubr.msk.f32.vlgmr.msra.gmra.mxu0 %vm1769_vm2, %v4163_v40  ;;  %v5676_v41 = vpop.f32.mrf.mxu1  ;;  %5703 = vmatpush3.msra.mxu1 %v3736_v37 }
 0x967   : > { %v5671_v42 = vpop.f32.mrf.mxu0  ;;  %5698 = vmatpush3.msra.mxu0 %v3735_v39  ;;  %5699 = vmatprep.mubr.msk.f32.mxu0 %vm5879_vm1, %v5878_v2 }
 0x968   : > { %5704 = vmatprep.mubr.msk.f32.mxu1 %vm5879_vm1, %v5878_v2  ;;  %5707 = vmatprep.subr.mxu0 %v5878_v2 }
 0x969   : > { %5718 = vmatprep.subr.mxu1 %v5878_v2 }
 0x96e   : > { %v4382_v43 = vpop.f32.mrf.mxu1 }
 0x96f   : > { %v4309_v44 = vpop.f32.mrf.mxu0  ;;  %5705 = vmatmul.mubr.msk.f32.vlgmr.msra.gmra.mxu1 %vm1769_vm2, %v4382_v43 }
 0x970   : > { %5700 = vmatmul.mubr.msk.f32.vlgmr.msra.gmra.mxu0 %vm1769_vm2, %v4309_v44  ;;  %v5686_v45 = vpop.f32.mrf.mxu1  ;;  %5734 = vmatprep.mubr.msk.f32.mxu1 %vm5879_vm1, %v5878_v2 }
 0x971   : > { %v5681_v46 = vpop.f32.mrf.mxu0  ;;  %5715 = vmatprep.mubr.msk.f32.mxu0 %vm5879_vm1, %v5878_v2  ;;  %5708 = vmatpush3.msra.mxu0 %v4725_v7 }
 0x972   : > { %5709 = vmatprep.subr.mxu0 %v5878_v2  ;;  %5719 = vmatpush3.msra.mxu1 %v4814_v11 }
 0x973   : > { %5720 = vmatprep.subr.mxu1 %v5878_v2 }
 0x974   : > { %5721 = vmatpush3.msra.mxu1 %v4813_v12 }
 0x975   : > { %5722 = vmatprep.subr.mxu1 %v5878_v2 }
 0x976   : > { %5723 = vmatpush3.msra.mxu1 %v4812_v13 }
 0x977   : > { %5724 = vmatprep.subr.mxu1 %v5878_v2 }
 0x978   : > { %5725 = vmatpush3.msra.mxu1 %v4811_v14 }
 0x979   : > { %5726 = vmatprep.subr.mxu1 %v5878_v2 }
 0x97a   : > { %5727 = vmatpush3.msra.mxu1 %v4810_v15 }
 0x97b   : > { %5728 = vmatprep.subr.mxu1 %v5878_v2 }
 0x97c   : > { %5729 = vmatpush3.msra.mxu1 %v4809_v26 }
 0x97d   : > { %5730 = vmatprep.subr.mxu1 %v5878_v2 }
 0x97e   : > { %5731 = vmatpush3.msra.mxu1 %v4808_v27 }
 0x97f   : > { %5732 = vmatprep.subr.mxu1 %v5878_v2 }
 0x980   : > { %5733 = vmatpush3.msra.mxu1 %v4807_v28 }
 0xa25   : > { %v4528_v47 = vpop.f32.mrf.mxu1 }
 0xa26   : > { %v4455_v48 = vpop.f32.mrf.mxu0  ;;  %v4679_v52 = vsel %vm920_vm0, %v4528_v47, 0.0 }
 0xa27   : > { %v5696_v49 = vpop.f32.mrf.mxu1  ;;  %v4678_v51 = vsel %vm920_vm0, %v4455_v48, 0.0  ;;  %v5135_v48 = vld [vmem:[%s6944_s22] ss:$0 sm:$0xff] }
 0xa28   : > { %v5691_v50 = vpop.f32.mrf.mxu0  ;;  %v4680_v54 = vadd.f32 %v4679_v52, %v4678_v51 }
 0xa29   : > { %v5136_v50 = vld [vmem:[%s6945_s23] ss:$0 sm:$0xff] }
 0xa2f   : > { %v4674_v53 = vpop.f32.mrf.mxu1 }
 0xa30   : > { %v4601_v55 = vpop.f32.mrf.mxu0  ;;  %v4683_v61 = vsel %vm920_vm0, %v4674_v53, 0.0 }
 0xa31   : > { %v4681_v56 = vsel %vm920_vm0, %v4601_v55, 0.0  ;;  %v5706_v57 = vpop.f32.mrf.mxu1 }
 0xa32   : > { %v4682_v58 = vadd.f32 %v4681_v56, %v4680_v54  ;;  %v5701_v59 = vpop.f32.mrf.mxu0 }
 0xa34   : > { %v4684_v62 = vadd.f32 %v4683_v61, %v4682_v58 }
 0xa36   : > { %v4691_v63 = vadd.f32 %v5128_v60, %v4684_v62 }
 0xa38   : > { %v4692_v0 = vadd.f32 %v4691_v63, %v6476_v16  ;;  %v4724_v16 = vld [vmem:[%s6940_s18 + $0x10] sm:$0xff] }
 0xa39   : > { %5710 = vmatpush3.msra.mxu0 %v4724_v16 }
 0xa3a   : > { %v4695_v9 = vsel %vm920_vm0, %v4692_v0, 0.0  ;;  %5711 = vmatprep.subr.mxu0 %v5878_v2 }
 0xa3b   : > { %4696 = vadd.xlane.f32.xlu0 %v4695_v9  ;;  %5712 = vmatpush3.msra.mxu0 %v4723_v8 }
 0xa3c   : > { %5713 = vmatprep.subr.mxu0 %v5878_v2 }
 0xa3d   : > { %5714 = vmatpush3.msra.mxu0 %v4722_v10 }
 0xac4   : > { %v4697_v1 = vpop.xlane.xlu0 %4696 }
 0xac5   : > { %v4698_v3 = vmul.f32 0.03125, %v4697_v1 }
 0xac7   : > { %v4699_v4 = vsub.f32 %v4692_v0, %v4698_v3 }
 0xac9   : > { %v4700_v5 = vmul.f32 %v4699_v4, %v4699_v4 }
 0xacb   : > { %v4701_v6 = vsel %vm920_vm0, %v4700_v5, 0.0 }
 0xacc   : > { %4702 = vadd.xlane.f32.xlu1 %v4701_v6 }
 0xb55   : > { %v4703_v17 = vpop.xlane.xlu1 %4702 }
 0xb56   : > { %v4704_v18 = vmul.f32 0.03125, %v4703_v17 }
 0xb58   : > { %v4705_v19 = vadd.f32 1e-05, %v4704_v18 }
 0xb5a   : > { %5812 = vrsqrt.f32 %v4705_v19 }
 0xb67   : > { %v5813_v20 = vpop.eup %5812 }
 0xb68   : > { %v4707_v22 = vmul.f32 %v5813_v20, %v4699_v4 }
 0xb6a   : > { %v4714_v24 = vmul.f32 %v5129_v21, %v4707_v22 }
 0xb6c   : > { %v4721_v25 = vadd.f32 %v5130_v23, %v4714_v24 }
 0xb6e   : > { %5716 = vmatmul.mubr.msk.f32.vlgmr.msra.gmra.mxu0 %vm920_vm0, %v4721_v25 }
 0xc2e   : > { %v4802_v30 = vpop.f32.mrf.mxu0 }
 0xc2f   : > { %v4803_v31 = vadd.f32 %v5131_v29, %v4802_v30 }
 0xc30   : > { %v5717_v32 = vpop.f32.mrf.mxu0 }
 0xc31   : > { %v4806_v33 = vmax.f32 %v4803_v31, 0.0 }
 0xc33   : > { %5735 = vmatmul.mubr.msk.f32.vlgmr.msra.gmra.mxu1 %vm4822_vm3, %v4806_v33 }
 0xcf3   : > { %v4892_v2 = vpop.f32.mrf.mxu1 }
 0xcf4   : > { %v4893_v35 = vadd.f32 %v5133_v34, %v4892_v2 }
 0xcf5   : > { %v5736_v36 = vpop.f32.mrf.mxu1 }
 0xcf6   : > { %v4896_v37 = vadd.f32 %v4893_v35, %v4721_v25 }
 0xcf8   : > { %v4899_v38 = vsel %vm920_vm0, %v4896_v37, 0.0 }
 0xcf9   : > { %4900 = vadd.xlane.f32.xlu0 %v4899_v38 }
 0xd82   : > { %v4901_v39 = vpop.xlane.xlu0 %4900 }
 0xd83   : > { %v4902_v40 = vmul.f32 0.03125, %v4901_v39 }
 0xd85   : > { %v4903_v41 = vsub.f32 %v4896_v37, %v4902_v40 }
 0xd87   : > { %v4904_v42 = vmul.f32 %v4903_v41, %v4903_v41 }
 0xd89   : > { %v4905_v43 = vsel %vm920_vm0, %v4904_v42, 0.0 }
 0xd8a   : > { %4906 = vadd.xlane.f32.xlu1 %v4905_v43 }
 0xe13   : > { %v4907_v44 = vpop.xlane.xlu1 %4906 }
 0xe14   : > { %v4908_v45 = vmul.f32 0.03125, %v4907_v44 }
 0xe16   : > { %v4909_v46 = vadd.f32 1e-05, %v4908_v45 }
 0xe18   : > { %5814 = vrsqrt.f32 %v4909_v46 }
 0xe25   : > { %v5815_v47 = vpop.eup %5814 }
 0xe26   : > { %v4911_v49 = vmul.f32 %v5815_v47, %v4903_v41 }
 0xe28   : > { %v4918_v51 = vmul.f32 %v5135_v48, %v4911_v49 }
 0xe2a   : > { %v4925_v52 = vadd.f32 %v5136_v50, %v4918_v51 }
 0xe2c   : > { %4926 = vst.msk [vmem:[%s767_s9] sm:$0xff] %vm920_vm0, %v4925_v52 }
 0xe2d   : > { %5829 = shalt.err (!%p5826_p3)
}
 0xe2e   : > { %s5830_s1 = scalar_lea.hbm %s4939_s10, 128  ;;  %s5834_s4 = scalar_lea.hbm %s6946_s24, 256 }
 0xe2f   : > { %p5831_p4 = scmp.ne.s32.totalorder %s4939_s10, %s5830_s1  ;;  %p5835_p9 = scmp.lt.s32.totalorder %s4939_s10, %s6946_s24 }
 0xe30   : > { %p5836_p10 = scmp.lt.s32.totalorder %s5834_s4, %s5830_s1 }
 0xe31   : > { %p5832_p7 = pnand %p5831_p4, %p6044_p5 }
 0xe32   : > { %p5837_p11 = por %p5836_p10, %p5835_p9 }
 0xe33   : > { %p5833_p8 = pneg %p5832_p7 }
 0xe35   : > { %p5838_p12 = pnand %p5837_p11, %p5833_p8 }
 0xe37   : > { %5841 = shalt.err (!%p5838_p12)
}
 0xe38   : > { %5737 = dma.vmem_to_hbm [thread:$0]  (%p6044_p5), %s4942_s25, 128, %s4939_s10, %s4928_s11  }
 0xe39 PF: > { %s6989_s2 = sld [smem:[#allocation5_spill]]  ;;  %p5743_p13 = scmp.ge.s32.totalorder %s5876_s28, 2 }
 0xe3b   : > { %p5740_p0 = pnand %p5743_p13, %p6048_p6 }
 0xe3d   : > { %p5741_p1 = pneg %p5740_p0 }
 0xe3f   : > { %s4953_s27 = sand.u32 1, %s6989_s2  }
 0xe40   : > { %s4954_s5 = scalar_lea.sflag [#allocation3], %s4953_s27 }
 0xe41   : > { %5859 = dma.done.wait (%p5741_p1), %s4954_s5, 128  }
 0xe42   : > { %5861 = vsyncadd (%p5741_p1), %s4954_s5, 4294967168  ;;  %s6991_s28 = sld [smem:[#allocation7_spill]]  ;;  %s6994_s5 = smov %s5868_s26 }
 0xe43   : > { %s6992_s6 = sld [smem:[#allocation6_spill]] }
 0xe44   : > { %s6993_s27 = sld [smem:[#allocation8_spill]] }
 0xe48   : > { %p34_p2 = scmp.ge.s32.totalorder %s6991_s28, 4  }
 0xe49   : > { %s6995_s26 = smov %s6992_s6 }
 0xe4a   :  { %36 = sbr.rel (!%p34_p2) target bundleno = 16 (0x10), region = 160 }
 0xe4f   :  { %4959 = vsyncpa [#allocation3], 1 }
 0xe50   :  { %4961 = vsyncpa [#allocation3 + $0x1], 1 }

</bundles_post_ra>
